<compile_context>
chip_gen: v5e
topology: v5e:2x2
jax: 0.10.0
libtpu: 0.0.40
codegen_flags: <defaults>
</compile_context>

<pallas_src>
import math
from functools import partial

import jax
import jax.numpy as jnp
from jax.experimental import pallas as pl
from jax.experimental.pallas import tpu as pltpu

LANE = 128


def _round_up(n, m):
    return ((n + m - 1) // m) * m


# ----------------------------- Pallas kernel --------------------------------
def vae_kernel(x_ref, eps_ref, w_ref, b_ref, ls_ref, out_ref,
               *, feat_pad, col_offs, d_in, latent):
    """One batch tile of the VAE forward.

    x_ref   [TB, d_in]    input tile (real lane width, f32)
    eps_ref [TB, latent]  N(0,1) noise tile (real lane width, f32)
    w_ref   [P, 6P]       all layer weights packed along lanes (bf16)
    b_ref   [1, 6P]       all layer biases, same column layout (f32)
    ls_ref  SMEM (1,)     log_scale parameter
    out_ref [TB, P]       x_pred in lanes [0,d_in); per-row KL in lane d_in;
                          per-row reconstruction log-lik in lane d_in+1.
    """
    P = feat_pad
    bf16 = jnp.bfloat16

    def layer(h_bf, idx, rows=feat_pad):
        o = col_offs[idx]
        return (jnp.dot(h_bf, w_ref[:rows, o:o + P],
                        preferred_element_type=jnp.float32)
                + b_ref[:, o:o + P])

    x = x_ref[...]                       # f32, kept for the reconstruction loss
    eps = eps_ref[...]                   # f32

    # ---- encoder: Linear + ReLU stack (bf16 MXU feed, f32 accumulate) ----
    # Padded output lanes are exactly 0 (zero-padded weights & biases).
    h = jnp.maximum(layer(x.astype(bf16), 0, rows=d_in), 0.0)
    h = jnp.maximum(layer(h.astype(bf16), 1), 0.0)

    # ---- compact fused head: mu in lanes [0,latent), log_var in [latent,2*latent)
    mulv = layer(h.astype(bf16), 2)
    mu = mulv[:, :latent]                # [TB, latent]
    log_var = mulv[:, latent:2 * latent]  # [TB, latent]

    # ---- reparameterization: z = mu + exp(0.5*log_var) * eps ----
    std = jnp.exp(0.5 * log_var)         # single exp; var = std*std (fp-rounding eq.)
    z = mu + std * eps
    var = std * std

    # ---- per-row KL(N(mu,var) || N(0,1)) ----
    kl_row = 0.5 * jnp.sum(var + mu * mu - 1.0 - log_var, axis=1, keepdims=True)

    # ---- decoder: Linear + ReLU stack, final Linear with no activation ----
    d = jnp.maximum(layer(z.astype(bf16), 3, rows=latent), 0.0)
    d = jnp.maximum(layer(d.astype(bf16), 4), 0.0)
    x_pred = layer(d.astype(bf16), 5)    # [TB, P]; lanes >= d_in are exactly 0

    # ---- per-row Gaussian reconstruction log-likelihood ----
    log_scale = ls_ref[0]
    inv_var2 = jnp.exp(-2.0 * log_scale)          # == exp(-log_scale)^2, one exp
    sq = jnp.sum(jnp.square(x - x_pred[:, :d_in]), axis=1, keepdims=True)
    rec_row = (d_in * (-0.5 * math.log(2.0 * math.pi) - log_scale)
               - 0.5 * inv_var2 * sq)

    # ---- fold per-row KL / rec into spare zero lanes of the lane-dense store ----
    lane = jax.lax.broadcasted_iota(jnp.int32, x_pred.shape, 1)
    out_ref[...] = jnp.where(lane == d_in, kl_row,
                             jnp.where(lane == d_in + 1, rec_row, x_pred))


# --------------------------- Static weight packing ----------------------------
def pack_params(params):
    """Pack all layer weights/biases once (hoisted out of the forward path)."""
    (we0, be0, we1, be1, wmu, bmu, wlv, blv,
     wd0, bd0, wd1, bd1, wd2, bd2, log_scale) = params
    f32 = jnp.float32

    d_in, e0 = we0.shape
    e1 = we1.shape[1]
    latent = wmu.shape[1]
    d0, d1 = wd0.shape[1], wd1.shape[1]
    assert 2 * latent <= LANE, "compact mu||log_var head needs 2*latent <= 128"

    # Common lane width; +2 spare lanes on the output segment carry KL / rec.
    P = _round_up(max(d_in + 2, e0, e1, 2 * latent, d0, d1), LANE)
    n_seg = 6                                    # enc0, enc1, head, dec0, dec1, dec_out
    total_cols = n_seg * P
    col_offs = tuple(i * P for i in range(n_seg))

    w = jnp.zeros((P, total_cols), f32)
    b = jnp.zeros((1, total_cols), f32)

    def put(w, b, seg, wi, bi, col=0):
        o = col_offs[seg] + col
        w = w.at[:wi.shape[0], o:o + wi.shape[1]].set(wi.astype(f32))
        b = b.at[:, o:o + bi.shape[-1]].set(bi.astype(f32).reshape(1, -1))
        return w, b

    w, b = put(w, b, 0, we0, be0)
    w, b = put(w, b, 1, we1, be1)
    w, b = put(w, b, 2, wmu, bmu)                      # mu  -> lanes [0, latent)
    w, b = put(w, b, 2, wlv, blv, col=latent)          # lvar-> lanes [latent, 2*latent)
    w, b = put(w, b, 3, wd0, bd0)
    w, b = put(w, b, 4, wd1, bd1)
    w, b = put(w, b, 5, wd2, bd2)

    meta = dict(P=P, col_offs=col_offs, total_cols=total_cols,
                d_in=d_in, latent=latent)
    # bf16 weights (MXU-native, halves DMA + VMEM); biases stay f32 (tiny).
    return (w.astype(jnp.bfloat16), b,
            log_scale.astype(f32).reshape((1,)), meta)


# ------------------------------- Wrapper -------------------------------------
def vae_forward_pallas(x, eps, packed, *, tile_b=512):
    w_pack, b_pack, ls, meta = packed
    P = meta["P"]
    col_offs = meta["col_offs"]
    total_cols = meta["total_cols"]
    d_in = meta["d_in"]
    latent = meta["latent"]
    f32 = jnp.float32

    B = x.shape[0]
    assert x.shape[1] == d_in and eps.shape[1] == latent

    # --- batch tiling (only the batch dim is padded) ---
    TB = min(tile_b, _round_up(B, 8))
    B_pad = _round_up(B, TB)
    if B_pad // TB < 2 and B > 8:
        # v7x has 2 TensorCores: keep >= 2 "parallel" batch tiles so both work.
        TB = _round_up(pl.cdiv(B_pad, 2), 8)
        B_pad = _round_up(B, TB)
    n_tiles = B_pad // TB

    x_p = jnp.pad(x.astype(f32), ((0, B_pad - B), (0, 0)))
    eps_p = jnp.pad(eps.astype(f32), ((0, B_pad - B), (0, 0)))

    kern = partial(vae_kernel, feat_pad=P, col_offs=col_offs,
                   d_in=d_in, latent=latent)

    grid_spec = pltpu.PrefetchScalarGridSpec(
        num_scalar_prefetch=0,
        grid=(n_tiles,),
        in_specs=[
            pl.BlockSpec((TB, d_in), lambda i: (i, 0)),          # x tile (real width)
            pl.BlockSpec((TB, latent), lambda i: (i, 0)),        # eps tile (real width)
            pl.BlockSpec((P, total_cols), lambda i: (0, 0)),     # weights (VMEM-resident)
            pl.BlockSpec((1, total_cols), lambda i: (0, 0)),     # biases  (VMEM-resident)
            pl.BlockSpec(memory_space=pltpu.MemorySpace.SMEM),   # log_scale scalar
        ],
        out_specs=pl.BlockSpec((TB, P), lambda i: (i, 0)),       # x_pred + KL/rec lanes
    )

    out_shape = jax.ShapeDtypeStruct((B_pad, P), f32)

    flops = 2 * B_pad * P * total_cols          # advisory; counts padded work
    bytes_accessed = (4 * (x_p.size + eps_p.size + B_pad * P)
                      + 2 * w_pack.size + 4 * b_pack.size)

    fn = pl.pallas_call(
        kern,
        out_shape=out_shape,
        grid_spec=grid_spec,
        compiler_params=pltpu.CompilerParams(
            dimension_semantics=("parallel",)),  # batch tiles shard over v7x cores
        cost_estimate=pl.CostEstimate(flops=flops,
                                      transcendentals=B_pad * P,
                                      bytes_accessed=bytes_accessed),
    )
    out = fn(x_p, eps_p, w_pack, b_pack, ls)

    # Drop padded lanes / padded batch rows; pull KL / rec out of the spare lanes.
    x_pred = out[:B, :d_in]
    kl = jnp.sum(out[:B, d_in]) / B
    rec = jnp.sum(out[:B, d_in + 1]) / B
    return x_pred, kl, rec


# --------------------------- Params & reference -------------------------------
def init_linear(key, in_dim, out_dim):
    """PyTorch-nn.Linear-style uniform init; weight returned as [in, out]."""
    kw, kb = jax.random.split(key)
    bound = 1.0 / math.sqrt(in_dim)
    w = jax.random.uniform(kw, (in_dim, out_dim), jnp.float32, -bound, bound)
    b = jax.random.uniform(kb, (1, out_dim), jnp.float32, -bound, bound)
    return w, b


def make_params(key, input_dims, encoder_dims, latent_dims):
    decoder_dims = encoder_dims[::-1]
    keys = jax.random.split(key, 8)
    we0, be0 = init_linear(keys[0], input_dims, encoder_dims[0])
    we1, be1 = init_linear(keys[1], encoder_dims[0], encoder_dims[1])
    wmu, bmu = init_linear(keys[2], encoder_dims[1], latent_dims)
    wlv, blv = init_linear(keys[3], encoder_dims[1], latent_dims)
    wd0, bd0 = init_linear(keys[4], latent_dims, decoder_dims[0])
    wd1, bd1 = init_linear(keys[5], decoder_dims[0], decoder_dims[1])
    wd2, bd2 = init_linear(keys[6], decoder_dims[1], input_dims)
    log_scale = jnp.zeros((1,), jnp.float32)   # nn.Parameter(torch.tensor([0.0]))
    return (we0, be0, we1, be1, wmu, bmu, wlv, blv,
            wd0, bd0, wd1, bd1, wd2, bd2, log_scale)


def vae_forward_ref(x, eps, params):
    """Pure-JAX reference.  Mirrors the kernel's bf16 MXU operands
    (f32 accumulation) so the check isolates kernel mechanics from the
    intentional bf16 quantization of the weights/activations."""
    (we0, be0, we1, be1, wmu, bmu, wlv, blv,
     wd0, bd0, wd1, bd1, wd2, bd2, log_scale) = params
    B = x.shape[0]

    def mm(a, w):
        return jnp.dot(a.astype(jnp.bfloat16), w.astype(jnp.bfloat16),
                       preferred_element_type=jnp.float32)

    h = jnp.maximum(mm(x, we0) + be0, 0.0)
    h = jnp.maximum(mm(h, we1) + be1, 0.0)
    mu = mm(h, wmu) + bmu
    log_var = mm(h, wlv) + blv
    z = mu + jnp.exp(0.5 * log_var) * eps
    var = jnp.exp(log_var)
    kl = 0.5 * jnp.sum(var + mu * mu - 1.0 - log_var) / B
    d = jnp.maximum(mm(z, wd0) + bd0, 0.0)
    d = jnp.maximum(mm(d, wd1) + bd1, 0.0)
    x_pred = mm(d, wd2) + bd2
    ls = log_scale[0]
    log_prob = (-0.5 * math.log(2.0 * math.pi) - ls
                - 0.5 * jnp.square((x - x_pred) * jnp.exp(-ls)))
    rec = jnp.sum(log_prob) / B
    return x_pred, kl, rec


if __name__ == "__main__":
    # Small MLP-VAE shapes; B=200 with tile_b=128 exercises two batch tiles
    # plus batch-row padding.  (At scale use tile_b=512-1024 on v5e/v6e.)
    B = 200
    input_dims = 32
    encoder_dims = [64, 32]
    latent_dims = 16

    key = jax.random.PRNGKey(0)
    kx, keps, kparam = jax.random.split(key, 3)
    x = jax.random.normal(kx, (B, input_dims), jnp.float32)
    eps = jax.random.normal(keps, (B, latent_dims), jnp.float32)  # q.rsample noise
    params = make_params(kparam, input_dims, encoder_dims, latent_dims)

    packed = pack_params(params)   # hoisted: packing runs once, not per forward
    x_pred, kl, rec = vae_forward_pallas(x, eps, packed, tile_b=128)
    jax.block_until_ready((x_pred, kl, rec))

    # Validate against the pure-JAX reference.
    x_pred_r, kl_r, rec_r = vae_forward_ref(x, eps, params)
    assert jnp.allclose(x_pred, x_pred_r, atol=5e-3, rtol=5e-3), "x_pred mismatch"
    assert jnp.allclose(kl, kl_r, atol=5e-3, rtol=5e-3), "kl mismatch"
    assert jnp.allclose(rec, rec_r, atol=5e-3, rtol=5e-3), "rec mismatch"

    print("KERNEL_OK")
</pallas_src>

<mosaic_0001>
module attributes {stable_mosaic.version = 11 : i64} {
  func.func @vae_kernel(%arg0: i32, %arg1: memref<128x32xf32, #tpu.memory_space<vmem>>, %arg2: memref<128x16xf32, #tpu.memory_space<vmem>>, %arg3: memref<128x768xbf16, #tpu.memory_space<vmem>>, %arg4: memref<1x768xf32, #tpu.memory_space<vmem>>, %arg5: memref<1xf32, #tpu.memory_space<smem>>, %arg6: memref<128x128xf32, #tpu.memory_space<vmem>>) attributes {dimension_semantics = [#tpu.dimension_semantics<parallel>], iteration_bounds = array<i64: 2>, scalar_prefetch = 0 : i64, scratch_operands = 0 : i64, tpu.core_type = #tpu.core_type<tc>, window_params = [{transform_indices = @transform_0, window_bounds = array<i64: 128, 32>}, {transform_indices = @transform_1, window_bounds = array<i64: 128, 16>}, {pipeline_mode = #tpu.pipeline_mode<synchronous>, transform_indices = @transform_2, window_bounds = array<i64: 128, 768>}, {pipeline_mode = #tpu.pipeline_mode<synchronous>, transform_indices = @transform_3, window_bounds = array<i64: 1, 768>}, {transform_indices = @transform_4, window_bounds = array<i64: 1>}, {transform_indices = @transform_5, window_bounds = array<i64: 128, 128>}]} {
    %c0 = arith.constant 0 : index
    %c0_0 = arith.constant 0 : index
    %0 = vector.load %arg1[%c0, %c0_0] : memref<128x32xf32, #tpu.memory_space<vmem>>, vector<128x32xf32>
    %c0_1 = arith.constant 0 : index
    %c0_2 = arith.constant 0 : index
    %1 = vector.load %arg2[%c0_1, %c0_2] : memref<128x16xf32, #tpu.memory_space<vmem>>, vector<128x16xf32>
    %2 = arith.truncf %0 : vector<128x32xf32> to vector<128x32xbf16>
    %c0_3 = arith.constant 0 : index
    %c0_4 = arith.constant 0 : index
    %3 = vector.load %arg3[%c0_3, %c0_4] : memref<128x768xbf16, #tpu.memory_space<vmem>>, vector<32x128xbf16>
    %cst = arith.constant dense<0.000000e+00> : vector<128x128xf32>
    %4 = tpu.matmul %2, %3, %cst {dimension_numbers = #tpu.dot_dimension_numbers<[1], [0], [0], [1], [0, 0, 1, 1], [], []>} : vector<128x32xbf16>, vector<32x128xbf16>, vector<128x128xf32> -> vector<128x128xf32>
    %c0_5 = arith.constant 0 : index
    %c0_6 = arith.constant 0 : index
    %5 = vector.load %arg4[%c0_5, %c0_6] : memref<1x768xf32, #tpu.memory_space<vmem>>, vector<1x128xf32>
    %6 = vector.broadcast %5 : vector<1x128xf32> to vector<128x128xf32>
    %7 = arith.addf %4, %6 : vector<128x128xf32>
    %cst_7 = arith.constant 0.000000e+00 : f32
    %8 = vector.broadcast %cst_7 : f32 to vector<128x128xf32>
    %9 = arith.maximumf %7, %8 : vector<128x128xf32>
    %10 = arith.truncf %9 : vector<128x128xf32> to vector<128x128xbf16>
    %c0_8 = arith.constant 0 : index
    %c128 = arith.constant 128 : index
    %11 = vector.load %arg3[%c0_8, %c128] : memref<128x768xbf16, #tpu.memory_space<vmem>>, vector<128x128xbf16>
    %cst_9 = arith.constant dense<0.000000e+00> : vector<128x128xf32>
    %12 = tpu.matmul %10, %11, %cst_9 {dimension_numbers = #tpu.dot_dimension_numbers<[1], [0], [0], [1], [0, 0, 1, 1], [], []>} : vector<128x128xbf16>, vector<128x128xbf16>, vector<128x128xf32> -> vector<128x128xf32>
    %c0_10 = arith.constant 0 : index
    %c128_11 = arith.constant 128 : index
    %13 = vector.load %arg4[%c0_10, %c128_11] : memref<1x768xf32, #tpu.memory_space<vmem>>, vector<1x128xf32>
    %14 = vector.broadcast %13 : vector<1x128xf32> to vector<128x128xf32>
    %15 = arith.addf %12, %14 : vector<128x128xf32>
    %cst_12 = arith.constant 0.000000e+00 : f32
    %16 = vector.broadcast %cst_12 : f32 to vector<128x128xf32>
    %17 = arith.maximumf %15, %16 : vector<128x128xf32>
    %18 = arith.truncf %17 : vector<128x128xf32> to vector<128x128xbf16>
    %c0_13 = arith.constant 0 : index
    %c256 = arith.constant 256 : index
    %19 = vector.load %arg3[%c0_13, %c256] : memref<128x768xbf16, #tpu.memory_space<vmem>>, vector<128x128xbf16>
    %cst_14 = arith.constant dense<0.000000e+00> : vector<128x128xf32>
    %20 = tpu.matmul %18, %19, %cst_14 {dimension_numbers = #tpu.dot_dimension_numbers<[1], [0], [0], [1], [0, 0, 1, 1], [], []>} : vector<128x128xbf16>, vector<128x128xbf16>, vector<128x128xf32> -> vector<128x128xf32>
    %c0_15 = arith.constant 0 : index
    %c256_16 = arith.constant 256 : index
    %21 = vector.load %arg4[%c0_15, %c256_16] : memref<1x768xf32, #tpu.memory_space<vmem>>, vector<1x128xf32>
    %22 = vector.broadcast %21 : vector<1x128xf32> to vector<128x128xf32>
    %23 = arith.addf %20, %22 : vector<128x128xf32>
    %24 = vector.extract_strided_slice %23 {offsets = [0, 0], sizes = [128, 16], strides = [1, 1]} : vector<128x128xf32> to vector<128x16xf32>
    %25 = vector.extract_strided_slice %23 {offsets = [0, 16], sizes = [128, 16], strides = [1, 1]} : vector<128x128xf32> to vector<128x16xf32>
    %cst_17 = arith.constant 5.000000e-01 : f32
    %26 = vector.broadcast %cst_17 : f32 to vector<128x16xf32>
    %27 = arith.mulf %26, %25 : vector<128x16xf32>
    %28 = math.exp %27 : vector<128x16xf32>
    %29 = arith.mulf %28, %1 : vector<128x16xf32>
    %30 = arith.addf %24, %29 : vector<128x16xf32>
    %31 = arith.mulf %28, %28 : vector<128x16xf32>
    %32 = arith.mulf %24, %24 : vector<128x16xf32>
    %33 = arith.addf %31, %32 : vector<128x16xf32>
    %cst_18 = arith.constant 1.000000e+00 : f32
    %34 = vector.broadcast %cst_18 : f32 to vector<128x16xf32>
    %35 = arith.subf %33, %34 : vector<128x16xf32>
    %36 = arith.subf %35, %25 : vector<128x16xf32>
    %cst_19 = arith.constant dense<0.000000e+00> : vector<128xf32>
    %37 = vector.multi_reduction <add>, %36, %cst_19 [1] : vector<128x16xf32> to vector<128xf32>
    %38 = vector.shape_cast %37 : vector<128xf32> to vector<128x1xf32>
    %cst_20 = arith.constant 5.000000e-01 : f32
    %39 = vector.broadcast %cst_20 : f32 to vector<128x1xf32>
    %40 = arith.mulf %39, %38 : vector<128x1xf32>
    %41 = arith.truncf %30 : vector<128x16xf32> to vector<128x16xbf16>
    %c0_21 = arith.constant 0 : index
    %c384 = arith.constant 384 : index
    %42 = vector.load %arg3[%c0_21, %c384] : memref<128x768xbf16, #tpu.memory_space<vmem>>, vector<16x128xbf16>
    %cst_22 = arith.constant dense<0.000000e+00> : vector<128x128xf32>
    %43 = tpu.matmul %41, %42, %cst_22 {dimension_numbers = #tpu.dot_dimension_numbers<[1], [0], [0], [1], [0, 0, 1, 1], [], []>} : vector<128x16xbf16>, vector<16x128xbf16>, vector<128x128xf32> -> vector<128x128xf32>
    %c0_23 = arith.constant 0 : index
    %c384_24 = arith.constant 384 : index
    %44 = vector.load %arg4[%c0_23, %c384_24] : memref<1x768xf32, #tpu.memory_space<vmem>>, vector<1x128xf32>
    %45 = vector.broadcast %44 : vector<1x128xf32> to vector<128x128xf32>
    %46 = arith.addf %43, %45 : vector<128x128xf32>
    %cst_25 = arith.constant 0.000000e+00 : f32
    %47 = vector.broadcast %cst_25 : f32 to vector<128x128xf32>
    %48 = arith.maximumf %46, %47 : vector<128x128xf32>
    %49 = arith.truncf %48 : vector<128x128xf32> to vector<128x128xbf16>
    %c0_26 = arith.constant 0 : index
    %c512 = arith.constant 512 : index
    %50 = vector.load %arg3[%c0_26, %c512] : memref<128x768xbf16, #tpu.memory_space<vmem>>, vector<128x128xbf16>
    %cst_27 = arith.constant dense<0.000000e+00> : vector<128x128xf32>
    %51 = tpu.matmul %49, %50, %cst_27 {dimension_numbers = #tpu.dot_dimension_numbers<[1], [0], [0], [1], [0, 0, 1, 1], [], []>} : vector<128x128xbf16>, vector<128x128xbf16>, vector<128x128xf32> -> vector<128x128xf32>
    %c0_28 = arith.constant 0 : index
    %c512_29 = arith.constant 512 : index
    %52 = vector.load %arg4[%c0_28, %c512_29] : memref<1x768xf32, #tpu.memory_space<vmem>>, vector<1x128xf32>
    %53 = vector.broadcast %52 : vector<1x128xf32> to vector<128x128xf32>
    %54 = arith.addf %51, %53 : vector<128x128xf32>
    %cst_30 = arith.constant 0.000000e+00 : f32
    %55 = vector.broadcast %cst_30 : f32 to vector<128x128xf32>
    %56 = arith.maximumf %54, %55 : vector<128x128xf32>
    %57 = arith.truncf %56 : vector<128x128xf32> to vector<128x128xbf16>
    %c0_31 = arith.constant 0 : index
    %c640 = arith.constant 640 : index
    %58 = vector.load %arg3[%c0_31, %c640] : memref<128x768xbf16, #tpu.memory_space<vmem>>, vector<128x128xbf16>
    %cst_32 = arith.constant dense<0.000000e+00> : vector<128x128xf32>
    %59 = tpu.matmul %57, %58, %cst_32 {dimension_numbers = #tpu.dot_dimension_numbers<[1], [0], [0], [1], [0, 0, 1, 1], [], []>} : vector<128x128xbf16>, vector<128x128xbf16>, vector<128x128xf32> -> vector<128x128xf32>
    %c0_33 = arith.constant 0 : index
    %c640_34 = arith.constant 640 : index
    %60 = vector.load %arg4[%c0_33, %c640_34] : memref<1x768xf32, #tpu.memory_space<vmem>>, vector<1x128xf32>
    %61 = vector.broadcast %60 : vector<1x128xf32> to vector<128x128xf32>
    %62 = arith.addf %59, %61 : vector<128x128xf32>
    %c0_35 = arith.constant 0 : index
    %63 = memref.load %arg5[%c0_35] : memref<1xf32, #tpu.memory_space<smem>>
    %cst_36 = arith.constant -2.000000e+00 : f32
    %64 = arith.mulf %cst_36, %63 : f32
    %65 = math.exp %64 : f32
    %66 = vector.extract_strided_slice %62 {offsets = [0, 0], sizes = [128, 32], strides = [1, 1]} : vector<128x128xf32> to vector<128x32xf32>
    %67 = arith.subf %0, %66 : vector<128x32xf32>
    %68 = arith.mulf %67, %67 : vector<128x32xf32>
    %cst_37 = arith.constant dense<0.000000e+00> : vector<128xf32>
    %69 = vector.multi_reduction <add>, %68, %cst_37 [1] : vector<128x32xf32> to vector<128xf32>
    %70 = vector.shape_cast %69 : vector<128xf32> to vector<128x1xf32>
    %cst_38 = arith.constant -0.918938517 : f32
    %71 = arith.subf %cst_38, %63 : f32
    %cst_39 = arith.constant 3.200000e+01 : f32
    %72 = arith.mulf %cst_39, %71 : f32
    %cst_40 = arith.constant 5.000000e-01 : f32
    %73 = arith.mulf %cst_40, %65 : f32
    %74 = vector.broadcast %73 : f32 to vector<128x1xf32>
    %75 = arith.mulf %74, %70 : vector<128x1xf32>
    %76 = vector.broadcast %72 : f32 to vector<128x1xf32>
    %77 = arith.subf %76, %75 : vector<128x1xf32>
    %78 = tpu.iota {dimensions = array<i32: 1>} : vector<128x128xi32>
    %c32_i32 = arith.constant 32 : i32
    %79 = vector.broadcast %c32_i32 : i32 to vector<128x128xi32>
    %80 = arith.cmpi eq, %78, %79 : vector<128x128xi32>
    %c33_i32 = arith.constant 33 : i32
    %81 = vector.broadcast %c33_i32 : i32 to vector<128x128xi32>
    %82 = arith.cmpi eq, %78, %81 : vector<128x128xi32>
    %83 = vector.shape_cast %77 : vector<128x1xf32> to vector<128x1xf32>
    %84 = vector.broadcast %83 : vector<128x1xf32> to vector<128x128xf32>
    %85 = arith.select %82, %84, %62 : vector<128x128xi1>, vector<128x128xf32>
    %86 = vector.shape_cast %40 : vector<128x1xf32> to vector<128x1xf32>
    %87 = vector.broadcast %86 : vector<128x1xf32> to vector<128x128xf32>
    %88 = arith.select %80, %87, %85 : vector<128x128xi1>, vector<128x128xf32>
    %c0_41 = arith.constant 0 : index
    %c0_42 = arith.constant 0 : index
    %89 = vector.load %arg6[%c0_41, %c0_42] : memref<128x128xf32, #tpu.memory_space<vmem>>, vector<128x128xf32>
    tpu.vector_store %arg6[%c0_41, %c0_42], %88 {strides = array<i32>} : memref<128x128xf32, #tpu.memory_space<vmem>>, vector<128x128xf32>,
    return
  }
  func.func @transform_0(%arg0: i32) -> (i32, i32) {
    %c0_i32 = arith.constant 0 : i32
    %c0_i32_0 = arith.constant 0 : i32
    return %arg0, %c0_i32 : i32, i32
  }
  func.func @transform_1(%arg0: i32) -> (i32, i32) {
    %c0_i32 = arith.constant 0 : i32
    %c0_i32_0 = arith.constant 0 : i32
    return %arg0, %c0_i32 : i32, i32
  }
  func.func @transform_2(%arg0: i32) -> (i32, i32) {
    %c0_i32 = arith.constant 0 : i32
    %c0_i32_0 = arith.constant 0 : i32
    %c0_i32_1 = arith.constant 0 : i32
    return %c0_i32, %c0_i32_0 : i32, i32
  }
  func.func @transform_3(%arg0: i32) -> (i32, i32) {
    %c0_i32 = arith.constant 0 : i32
    %c0_i32_0 = arith.constant 0 : i32
    %c0_i32_1 = arith.constant 0 : i32
    return %c0_i32, %c0_i32_0 : i32, i32
  }
  func.func @transform_4(%arg0: i32) -> i32 {
    %c0_i32 = arith.constant 0 : i32
    %c0_i32_0 = arith.constant 0 : i32
    return %c0_i32 : i32
  }
  func.func @transform_5(%arg0: i32) -> (i32, i32) {
    %c0_i32 = arith.constant 0 : i32
    %c0_i32_0 = arith.constant 0 : i32
    return %arg0, %c0_i32 : i32, i32
  }
}

</mosaic_0001>

<bundles_post_ra>
// kernel: tpu_custom_call.1
= control target key start
LH: loop header
LB: loop body
LE: loop exit
PB: predicated region body
PF: predicated region fallthrough
CT: control target
= control target key end

     0   :  { %s3225_s0 = inlined_call_operand.vmem [shape: f32[256,32], index: 0, kind: input, shape index: {}]   ;;  %s3226_s1 = inlined_call_operand.vmem [shape: f32[256,16], index: 1, kind: input, shape index: {}]   ;;  %s3227_s2 = inlined_call_operand.vmem [shape: bf16[128,768], index: 2, kind: input, shape index: {}]   ;;  %s3228_s3 = inlined_call_operand.vmem [shape: f32[1,768], index: 3, kind: input, shape index: {}]   ;;  %s3229_s4 = inlined_call_operand.<no memory space> [shape: f32[1], index: 4, kind: input, shape index: {}]   ;;  %s3230_s5 = inlined_call_operand.hbm [shape: f32[256,128], index: 5, kind: output, shape index: {}]  }
   0x1   :  { %10 = sst [smem:[#allocation2]] %s3229_s4 }
   0x2   :  { %11 = vsyncpa [#allocation4], 0 }
   0x3   :  { %13 = vsyncpa [#allocation4 + $0x1], 0  ;;  %s2214_s20 = smov 0   ;;  %s2216_s21 = smov 0  }
   0x4   :  { %s2218_s22 = smov 0   ;;  %s2220_s23 = smov 0  }
   0x5 LB: > { %s2235_s4 = sadd.s32 4294967295, %s2175_s23   ;;  %s1787_s24 = sadd.s32 4294967294, %s2175_s23   ;;  %s2175_s23 = sphi %s2220_s23, %s3236_s23   ;;  %s2171_s22 = sphi %s2218_s22, %s3235_s22   ;;  %s2167_s21 = sphi %s2216_s21, %s3234_s21   ;;  %s2163_s20 = sphi %s2214_s20, %s3233_s20  }
   0x6   : > { %s2239_s25 = sadd.s32 1, %s2175_s23   ;;  %s141_s26 = sadd.s32 1, %s2171_s22 }
   0x7   : > { %s138_s27 = ssub.s32 %s2175_s23, %s2239_s25  ;;  %p151_p0 = scmp.ne.s32.totalorder %s2171_s22, %s2167_s21 }
   0x8   : > { %p139_p1 = scmp.eq.s32.totalorder %s138_s27, 0  ;;  %p152_p2 = scmp.eq.s32.totalorder %s2235_s4, 1 }
   0x9   : > { %p157_p3 = scmp.ne.s32.totalorder %s2167_s21, %s2163_s20  ;;  %p158_p4 = scmp.eq.s32.totalorder %s1787_s24, 1 }
   0xa   : > { %s2250_s28 = scalar_select %p139_p1, %s2171_s22, %s141_s26  }
   0xb   : > { %p2252_p5 = por %p152_p2, %p151_p0  ;;  %p2256_p6 = por %p158_p4, %p157_p3 }
   0xc   : > { %p1790_p7 = scmp.ge.s32.totalorder %s2175_s23, 1  ;;  %p203_p8 = scmp.lt.s32.totalorder %s2175_s23, 3 }
   0xe   : > { %p204_p9 = pnand %p1790_p7, %p203_p8 }
   0xf   : > { %s1792_s14 = sshll.u32 (!%p204_p9), %s2235_s4, 4  ;;  %s2177_s24 = smov (!%p204_p9), 16  }
  0x10   : > { %207 = sbr.rel (%p204_p9) target bundleno = 1395 (0x573), region = 40  ;;  %p237_p10 = scmp.lt.s32.totalorder (!%p204_p9), %s1792_s14, 31 }
  0x11   : > { %s2178_s26 = smov (!%p204_p9), 112   ;;  %s233_s7 = sand.u32 (!%p204_p9), 1, %s2167_s21  }
  0x12   : > { %s1791_s8 = sshll.u32 (!%p204_p9), %s233_s7, 7  ;;  %s1698_s13 = scalar_lea.sflag (!%p204_p9), [#allocation4], %s233_s7 }
  0x13   : > { %s3039_s9 = scalar_lea.vmem (!%p204_p9), [#allocation3], %s1791_s8 }
  0x15   : > { %v1802_v0 = vld [vmem:[%s3227_s2 + $0x30] sm:$0xf]  ;;  %v1974_v1 = vld [vmem:[%s3227_s2 + $0x44] sm:$0xf0]  ;;  %v1798_v2 = vld [vmem:[%s3227_s2] sm:$0xf] }
  0x16   : > { %v1803_v3 = vor.u32 %v1974_v1, %v1802_v0  ;;  %v1973_v4 = vld [vmem:[%s3227_s2 + $0x14] sm:$0xf0]  ;;  %s3238_s14 = smov (!%p237_p10, %s1792_s14), 31  ;;  %vm310_vm0 = vcmask 261120   ;;  %v1842_v17 = vld [vmem:[%s3227_s2 + $0x154] sm:$0xf] }
  0x17   : > { %v1799_v5 = vor.u32 %v1973_v4, %v1798_v2  ;;  %s1793_s15 = sshll.u32 %s3238_s14, 3  ;;  %v1982_v19 = vld [vmem:[%s3227_s2 + $0x168] sm:$0xf0]  ;;  %v1838_v21 = vld [vmem:[%s3227_s2 + $0x124] sm:$0xf]  ;;  %vm1082_vm1 = vcmask 130048  }
  0x18   : > { %341 = vmatpush.bf16.msra.mxu0 %v1803_v3  ;;  %2009 = vmatpush.bf16.msra.mxu1 %v1803_v3  ;;  %s2283_s18 = scalar_lea.vmem %s3225_s0, %s1793_s15  ;;  %v1843_v20 = vor.u32 %v1982_v19, %v1842_v17  ;;  %v1981_v22 = vld [vmem:[%s3227_s2 + $0x138] sm:$0xf0]  ;;  %v1834_v24 = vld [vmem:[%s3227_s2 + $0xf4] sm:$0xf]  ;;  %v1980_v25 = vld [vmem:[%s3227_s2 + $0x108] sm:$0xf0]  ;;  %s2437_s19 = scalar_lea.vmem %s3226_s1, %s1793_s15 }
  0x19   : > { %v250_v6 = vld [vmem:[%s2283_s18] sm:$0xff]  ;;  %v251_v7 = vld [vmem:[%s2283_s18 + $0x8] sm:$0xff]  ;;  %v252_v9 = vld [vmem:[%s2283_s18 + $0x10] sm:$0xff]  ;;  %v1839_v23 = vor.u32 %v1981_v22, %v1838_v21  ;;  %v1835_v27 = vor.u32 %v1980_v25, %v1834_v24 }
  0x1a   : > { %v282_v8 = vpack.c.bf16 %v251_v7, %v250_v6  ;;  %v253_v10 = vld [vmem:[%s2283_s18 + $0x18] sm:$0xff]  ;;  %v254_v12 = vld [vmem:[%s2283_s18 + $0x20] sm:$0xff]  ;;  %v255_v13 = vld [vmem:[%s2283_s18 + $0x28] sm:$0xff] }
  0x1b   : > { %v283_v11 = vpack.c.bf16 %v253_v10, %v252_v9  ;;  %v284_v14 = vpack.c.bf16 %v255_v13, %v254_v12  ;;  %v260_v15 = vld [vmem:[%s2283_s18 + $0x50] sm:$0xff]  ;;  %v261_v16 = vld [vmem:[%s2283_s18 + $0x58] sm:$0xff]  ;;  %v1830_v29 = vld [vmem:[%s3227_s2 + $0xc4] sm:$0xf] }
  0x1c   : > { %342 = vmatpush.bf16.msra.mxu0 %v1799_v5  ;;  %2010 = vmatpush.bf16.msra.mxu1 %v1799_v5  ;;  %v287_v18 = vpack.c.bf16 %v261_v16, %v260_v15  ;;  %v256_v26 = vld [vmem:[%s2283_s18 + $0x30] sm:$0xff]  ;;  %v257_v28 = vld [vmem:[%s2283_s18 + $0x38] sm:$0xff]  ;;  %v262_v32 = vld [vmem:[%s2283_s18 + $0x60] sm:$0xff] }
  0x1d   : > { %v1979_v30 = vld [vmem:[%s3227_s2 + $0xd8] sm:$0xf0]  ;;  %v285_v31 = vpack.c.bf16 %v257_v28, %v256_v26  ;;  %v263_v33 = vld [vmem:[%s2283_s18 + $0x68] sm:$0xff]  ;;  %v1826_v35 = vld [vmem:[%s3227_s2 + $0x94] sm:$0xf] }
  0x1e   : > { %v1831_v34 = vor.u32 %v1979_v30, %v1830_v29  ;;  %v1978_v36 = vld [vmem:[%s3227_s2 + $0xa8] sm:$0xf0]  ;;  %v288_v37 = vpack.c.bf16 %v263_v33, %v262_v32  ;;  %v1822_v39 = vld [vmem:[%s3227_s2 + $0x64] sm:$0xf]  ;;  %v1977_v40 = vld [vmem:[%s3227_s2 + $0x78] sm:$0xf0] }
  0x1f   : > { %1804 = vmatmul.msk.bf16.vlgmr.msra.gmra.mxu0 %vm310_vm0, %v282_v8  ;;  %1809 = vmatmul.msk.bf16.vlgmr.msra.gmra.mxu1 %vm310_vm0, %v287_v18  ;;  %v1827_v38 = vor.u32 %v1978_v36, %v1826_v35  ;;  %v1823_v41 = vor.u32 %v1977_v40, %v1822_v39  ;;  %v258_v42 = vld [vmem:[%s2283_s18 + $0x40] sm:$0xff]  ;;  %v259_v43 = vld [vmem:[%s2283_s18 + $0x48] sm:$0xff]  ;;  %v264_v45 = vld [vmem:[%s2283_s18 + $0x70] sm:$0xff] }
  0x20   : > { %476 = vmatpush.bf16.msrb.mxu1 %v1843_v20  ;;  %v286_v44 = vpack.c.bf16 %v259_v43, %v258_v42  ;;  %v265_v46 = vld [vmem:[%s2283_s18 + $0x78] sm:$0xff]  ;;  %v1818_v48 = vld [vmem:[%s3227_s2 + $0x34] sm:$0xf]  ;;  %v1976_v49 = vld [vmem:[%s3227_s2 + $0x48] sm:$0xf0] }
  0x21   : > { %v289_v47 = vpack.c.bf16 %v265_v46, %v264_v45  ;;  %v1819_v50 = vor.u32 %v1976_v49, %v1818_v48  ;;  %v1814_v51 = vld [vmem:[%s3227_s2 + $0x4] sm:$0xf]  ;;  %v1975_v52 = vld [vmem:[%s3227_s2 + $0x18] sm:$0xf0]  ;;  %v2360_v55 = vld [vmem:[%s3228_s3] ss:$0 sm:$0xff] }
  0x22   : > { %v1815_v53 = vor.u32 %v1975_v52, %v1814_v51  ;;  %v1874_v28 = vld [vmem:[%s3227_s2 + $0x158] sm:$0xf]  ;;  %v1990_v29 = vld [vmem:[%s3227_s2 + $0x16c] sm:$0xf0]  ;;  %v1989_v39 = vld [vmem:[%s3227_s2 + $0x13c] sm:$0xf0] }
  0x23   : > { %v1875_v30 = vor.u32 %v1990_v29, %v1874_v28  ;;  %v1988_v42 = vld [vmem:[%s3227_s2 + $0x10c] sm:$0xf0]  ;;  %v1987_v45 = vld [vmem:[%s3227_s2 + $0xdc] sm:$0xf0]  ;;  %v1858_v52 = vld [vmem:[%s3227_s2 + $0x98] sm:$0xf] }
  0x24   : > { %477 = vmatpush.bf16.msrb.mxu1 %v1839_v23 }
  0x25   : > { %617 = vmatpush.bf16.msra.mxu2 %v1875_v30 }
  0x28   : > { %478 = vmatpush.bf16.msrb.mxu1 %v1835_v27 }
  0x2c   : > { %479 = vmatpush.bf16.msrb.mxu1 %v1831_v34 }
  0x2f   : > { %1805 = vmatmul.msk.bf16.gmra.mxu0 %vm310_vm0, %v283_v11  ;;  %1810 = vmatmul.msk.bf16.gmra.mxu1 %vm310_vm0, %v288_v37 }
  0x30   : > { %480 = vmatpush.bf16.msrb.mxu1 %v1827_v38  ;;  %v1870_v38 = vld [vmem:[%s3227_s2 + $0x128] sm:$0xf] }
  0x31   : > { %v1871_v40 = vor.u32 %v1989_v39, %v1870_v38 }
  0x33   : > { %618 = vmatpush.bf16.msra.mxu2 %v1871_v40 }
  0x34   : > { %481 = vmatpush.bf16.msrb.mxu1 %v1823_v41  ;;  %v1866_v41 = vld [vmem:[%s3227_s2 + $0xf8] sm:$0xf] }
  0x35   : > { %v1867_v43 = vor.u32 %v1988_v42, %v1866_v41  ;;  %v270_v41 = vld [vmem:[%s2437_s19 + $0x20] sm:$0xff] }
  0x36   : > { %738 = vrot.lane.b32.xlu2 %v270_v41, %s2177_s24 }
  0x37   : > { %619 = vmatpush.bf16.msra.mxu2 %v1867_v43 }
  0x38   : > { %482 = vmatpush.bf16.msrb.mxu1 %v1819_v50 }
  0x3c   : > { %483 = vmatpush.bf16.msrb.mxu1 %v1815_v53  ;;  %v1986_v53 = vld [vmem:[%s3227_s2 + $0xac] sm:$0xf0] }
  0x3f   : > { %1806 = vmatmul.msk.bf16.gmra.mxu0 %vm310_vm0, %v284_v14  ;;  %1811 = vmatmul.msk.bf16.gmra.mxu1 %vm310_vm0, %v289_v47 }
  0x4f   : > { %1807 = vmatmul.msk.bf16.gmra.mxu0 %vm310_vm0, %v285_v31 }
  0x5f   : > { %1808 = vmatmul.msk.bf16.gmra.mxu0 %vm310_vm0, %v286_v44  ;;  %v1862_v44 = vld [vmem:[%s3227_s2 + $0xc8] sm:$0xf] }
  0x60   : > { %v1863_v48 = vor.u32 %v1987_v45, %v1862_v44 }
  0x62   : > { %620 = vmatpush.bf16.msra.mxu2 %v1863_v48 }
  0x9c   : > { %v344_v54 = vpop.f32.mrf.mxu0  ;;  %v369_v19 = vpop.f32.mrf.mxu1 }
  0x9d   : > { %v345_v56 = vadd.f32 %v2360_v55, %v344_v54  ;;  %v370_v32 = vadd.f32 %v2360_v55, %v369_v19  ;;  %v1859_v54 = vor.u32 %v1986_v53, %v1858_v52 }
  0x9f   : > { %v384_v59 = vmax.f32 %v345_v56, 0.0  ;;  %v394_v34 = vmax.f32 %v370_v32, 0.0  ;;  %621 = vmatpush.bf16.msra.mxu2 %v1859_v54 }
  0xa4   : > { %v346_v57 = vpop.f32.mrf.mxu0  ;;  %v371_v23 = vpop.f32.mrf.mxu1 }
  0xa5   : > { %v347_v58 = vadd.f32 %v2360_v55, %v346_v57  ;;  %v372_v33 = vadd.f32 %v2360_v55, %v371_v23  ;;  %v1854_v57 = vld [vmem:[%s3227_s2 + $0x68] sm:$0xf]  ;;  %v268_v23 = vld [vmem:[%s2437_s19 + $0x10] sm:$0xff] }
  0xa6   : > { %734 = vrot.lane.b32.xlu1 %v268_v23, %s2177_s24 }
  0xa7   : > { %v385_v60 = vmax.f32 %v347_v58, 0.0  ;;  %v395_v35 = vmax.f32 %v372_v33, 0.0  ;;  %v1985_v58 = vld [vmem:[%s3227_s2 + $0x7c] sm:$0xf0] }
  0xa9   : > { %v400_v61 = vpack.c.bf16 %v385_v60, %v384_v59  ;;  %v405_v36 = vpack.c.bf16 %v395_v35, %v394_v34  ;;  %v1855_v59 = vor.u32 %v1985_v58, %v1854_v57 }
  0xab   : > { %484 = vmatmul.bf16.vlgmr.msrb.gmra.mxu1 %v400_v61  ;;  %622 = vmatpush.bf16.msra.mxu2 %v1855_v59  ;;  %v1850_v61 = vld [vmem:[%s3227_s2 + $0x38] sm:$0xf] }
  0xac   : > { %v349_v62 = vpop.f32.mrf.mxu0  ;;  %v374_v31 = vpop.f32.mrf.mxu1 }
  0xad   : > { %v350_v63 = vadd.f32 %v2360_v55, %v349_v62  ;;  %v375_v46 = vadd.f32 %v2360_v55, %v374_v31  ;;  %v1984_v62 = vld [vmem:[%s3227_s2 + $0x4c] sm:$0xf0] }
  0xaf   : > { %v386_v1 = vmax.f32 %v350_v63, 0.0  ;;  %v396_v50 = vmax.f32 %v375_v46, 0.0  ;;  %v1851_v63 = vor.u32 %v1984_v62, %v1850_v61 }
  0xb1   : > { %623 = vmatpush.bf16.msra.mxu2 %v1851_v63 }
  0xb4   : > { %v351_v0 = vpop.f32.mrf.mxu0  ;;  %v376_v37 = vpop.f32.mrf.mxu1 }
  0xb5   : > { %v352_v2 = vadd.f32 %v2360_v55, %v351_v0  ;;  %v377_v47 = vadd.f32 %v2360_v55, %v376_v37 }
  0xb7   : > { %v387_v3 = vmax.f32 %v352_v2, 0.0  ;;  %v397_v51 = vmax.f32 %v377_v47, 0.0  ;;  %v1846_v2 = vld [vmem:[%s3227_s2 + $0x8] sm:$0xf] }
  0xb8   : > { %v271_v47 = vld [vmem:[%s2437_s19 + $0x28] sm:$0xff] }
  0xb9   : > { %v401_v4 = vpack.c.bf16 %v387_v3, %v386_v1  ;;  %v406_v56 = vpack.c.bf16 %v397_v51, %v396_v50  ;;  %v1983_v3 = vld [vmem:[%s3227_s2 + $0x1c] sm:$0xf0]  ;;  %740 = vrot.lane.b32.xlu2 %v271_v47, %s2177_s24  ;;  %v272_v50 = vld [vmem:[%s2437_s19 + $0x30] sm:$0xff] }
  0xbb   : > { %489 = vmatmul.bf16.gmra.mxu1 %v401_v4  ;;  %v1847_v4 = vor.u32 %v1983_v3, %v1846_v2 }
  0xbc   : > { %v354_v5 = vpop.f32.mrf.mxu0  ;;  %v379_v49 = vpop.f32.mrf.mxu1 }
  0xbd   : > { %v355_v6 = vadd.f32 %v2360_v55, %v354_v5  ;;  %v380_v0 = vadd.f32 %v2360_v55, %v379_v49  ;;  %624 = vmatpush.bf16.msra.mxu2 %v1847_v4 }
  0xbf   : > { %v388_v8 = vmax.f32 %v355_v6, 0.0  ;;  %v398_v5 = vmax.f32 %v380_v0, 0.0 }
  0xc1   : > { %742 = vrot.lane.b32.xlu2 %v272_v50, %s2177_s24 }
  0xc4   : > { %v356_v7 = vpop.f32.mrf.mxu0  ;;  %v381_v60 = vpop.f32.mrf.mxu1 }
  0xc5   : > { %v357_v9 = vadd.f32 %v2360_v55, %v356_v7  ;;  %v382_v1 = vadd.f32 %v2360_v55, %v381_v60 }
  0xc7   : > { %v389_v10 = vmax.f32 %v357_v9, 0.0  ;;  %v399_v6 = vmax.f32 %v382_v1, 0.0 }
  0xc9   : > { %v402_v11 = vpack.c.bf16 %v389_v10, %v388_v8  ;;  %v407_v7 = vpack.c.bf16 %v399_v6, %v398_v5 }
  0xcb   : > { %494 = vmatmul.bf16.gmra.mxu1 %v402_v11 }
  0xcc   : > { %v359_v12 = vpop.f32.mrf.mxu0 }
  0xcd   : > { %v360_v13 = vadd.f32 %v2360_v55, %v359_v12 }
  0xcf   : > { %v390_v15 = vmax.f32 %v360_v13, 0.0 }
  0xd4   : > { %v361_v14 = vpop.f32.mrf.mxu0 }
  0xd5   : > { %v362_v16 = vadd.f32 %v2360_v55, %v361_v14  ;;  %v266_v14 = vld [vmem:[%s2437_s19] sm:$0xff] }
  0xd6   : > { %730 = vrot.lane.b32.xlu0 %v266_v14, %s2177_s24 }
  0xd7   : > { %v391_v17 = vmax.f32 %v362_v16, 0.0 }
  0xd9   : > { %v403_v18 = vpack.c.bf16 %v391_v17, %v390_v15  ;;  %v267_v17 = vld [vmem:[%s2437_s19 + $0x8] sm:$0xff] }
  0xdb   : > { %499 = vmatmul.bf16.gmra.mxu1 %v403_v18 }
  0xdc   : > { %v364_v20 = vpop.f32.mrf.mxu0 }
  0xdd   : > { %v365_v21 = vadd.f32 %v2360_v55, %v364_v20 }
  0xde   : > { %732 = vrot.lane.b32.xlu0 %v267_v17, %s2177_s24 }
  0xdf   : > { %v392_v24 = vmax.f32 %v365_v21, 0.0 }
  0xe4   : > { %v366_v22 = vpop.f32.mrf.mxu0 }
  0xe5   : > { %v367_v25 = vadd.f32 %v2360_v55, %v366_v22  ;;  %v2429_v55 = vld [vmem:[%s3228_s3 + $0x1] ss:$0 sm:$0xff] }
  0xe7   : > { %v393_v26 = vmax.f32 %v367_v25, 0.0 }
  0xe9   : > { %v404_v27 = vpack.c.bf16 %v393_v26, %v392_v24  ;;  %v269_v26 = vld [vmem:[%s2437_s19 + $0x18] sm:$0xff] }
  0xea   : > { %736 = vrot.lane.b32.xlu1 %v269_v26, %s2177_s24 }
  0xeb   : > { %504 = vmatmul.bf16.gmra.mxu1 %v404_v27 }
  0xfb   : > { %509 = vmatmul.bf16.gmra.mxu1 %v405_v36 }
 0x10b   : > { %514 = vmatmul.bf16.gmra.mxu1 %v406_v56 }
 0x11b   : > { %519 = vmatmul.bf16.gmra.mxu1 %v407_v7 }
 0x128   : > { %v485_v8 = vpop.f32.mrf.mxu1 }
 0x129   : > { %v486_v9 = vadd.f32 %v2429_v55, %v485_v8  ;;  %v2471_v8 = vld [vmem:[%s3228_s3 + $0x2] ss:$0 sm:$0xff] }
 0x12b   : > { %v525_v12 = vmax.f32 %v486_v9, 0.0 }
 0x130   : > { %v487_v10 = vpop.f32.mrf.mxu1 }
 0x131   : > { %v488_v11 = vadd.f32 %v2429_v55, %v487_v10 }
 0x133   : > { %v526_v13 = vmax.f32 %v488_v11, 0.0 }
 0x135   : > { %v541_v15 = vpack.c.bf16 %v526_v13, %v525_v12 }
 0x137   : > { %625 = vmatmul.bf16.vlgmr.msra.gmra.mxu2 %v541_v15 }
 0x138   : > { %v490_v16 = vpop.f32.mrf.mxu1 }
 0x139   : > { %v491_v18 = vadd.f32 %v2429_v55, %v490_v16 }
 0x13b   : > { %v527_v20 = vmax.f32 %v491_v18, 0.0 }
 0x140   : > { %v492_v19 = vpop.f32.mrf.mxu1 }
 0x141   : > { %v493_v21 = vadd.f32 %v2429_v55, %v492_v19 }
 0x143   : > { %v528_v22 = vmax.f32 %v493_v21, 0.0 }
 0x145   : > { %v542_v24 = vpack.c.bf16 %v528_v22, %v527_v20 }
 0x147   : > { %630 = vmatmul.bf16.gmra.mxu2 %v542_v24  ;;  %v273_v24 = vld [vmem:[%s2437_s19 + $0x38] sm:$0xff] }
 0x148   : > { %v495_v25 = vpop.f32.mrf.mxu1  ;;  %v731_v14 = vpop.permute.xlu0 %730 }
 0x149   : > { %v496_v27 = vadd.f32 %v2429_v55, %v495_v25 }
 0x14b   : > { %v529_v29 = vmax.f32 %v496_v27, 0.0 }
 0x150   : > { %v497_v28 = vpop.f32.mrf.mxu1  ;;  %v733_v21 = vpop.permute.xlu0 %732 }
 0x151   : > { %v498_v30 = vadd.f32 %v2429_v55, %v497_v28 }
 0x153   : > { %v530_v31 = vmax.f32 %v498_v30, 0.0 }
 0x155   : > { %v543_v32 = vpack.c.bf16 %v530_v31, %v529_v29  ;;  %v735_v29 = vpop.permute.xlu1 %734 }
 0x157   : > { %635 = vmatmul.bf16.gmra.mxu2 %v543_v32  ;;  %v274_v32 = vld [vmem:[%s2437_s19 + $0x40] sm:$0xff] }
 0x158   : > { %v500_v33 = vpop.f32.mrf.mxu1 }
 0x159   : > { %v501_v34 = vadd.f32 %v2429_v55, %v500_v33 }
 0x15b   : > { %v531_v36 = vmax.f32 %v501_v34, 0.0 }
 0x160   : > { %v502_v35 = vpop.f32.mrf.mxu1 }
 0x161   : > { %v503_v37 = vadd.f32 %v2429_v55, %v502_v35 }
 0x163   : > { %v532_v38 = vmax.f32 %v503_v37, 0.0  ;;  %v737_v37 = vpop.permute.xlu1 %736 }
 0x165   : > { %v544_v39 = vpack.c.bf16 %v532_v38, %v531_v36 }
 0x167   : > { %640 = vmatmul.bf16.gmra.mxu2 %v544_v39 }
 0x168   : > { %v505_v40 = vpop.f32.mrf.mxu1 }
 0x169   : > { %v506_v42 = vadd.f32 %v2429_v55, %v505_v40  ;;  %v275_v40 = vld [vmem:[%s2437_s19 + $0x48] sm:$0xff] }
 0x16b   : > { %v533_v44 = vmax.f32 %v506_v42, 0.0 }
 0x170   : > { %v507_v43 = vpop.f32.mrf.mxu1 }
 0x171   : > { %v508_v45 = vadd.f32 %v2429_v55, %v507_v43  ;;  %v739_v43 = vpop.permute.xlu2 %738 }
 0x173   : > { %v534_v46 = vmax.f32 %v508_v45, 0.0 }
 0x175   : > { %v545_v48 = vpack.c.bf16 %v534_v46, %v533_v44 }
 0x177   : > { %645 = vmatmul.bf16.gmra.mxu2 %v545_v48  ;;  %v276_v48 = vld [vmem:[%s2437_s19 + $0x50] sm:$0xff] }
 0x178   : > { %v510_v49 = vpop.f32.mrf.mxu1 }
 0x179   : > { %v511_v51 = vadd.f32 %v2429_v55, %v510_v49 }
 0x17b   : > { %v535_v54 = vmax.f32 %v511_v51, 0.0 }
 0x180   : > { %v512_v52 = vpop.f32.mrf.mxu1 }
 0x181   : > { %v513_v53 = vadd.f32 %v2429_v55, %v512_v52 }
 0x183   : > { %v536_v56 = vmax.f32 %v513_v53, 0.0  ;;  %v741_v53 = vpop.permute.xlu2 %740 }
 0x185   : > { %v546_v57 = vpack.c.bf16 %v536_v56, %v535_v54 }
 0x187   : > { %650 = vmatmul.bf16.gmra.mxu2 %v546_v57  ;;  %v277_v57 = vld [vmem:[%s2437_s19 + $0x58] sm:$0xff] }
 0x188   : > { %v515_v58 = vpop.f32.mrf.mxu1 }
 0x189   : > { %v516_v59 = vadd.f32 %v2429_v55, %v515_v58 }
 0x18b   : > { %v537_v62 = vmax.f32 %v516_v59, 0.0 }
 0x190   : > { %v517_v60 = vpop.f32.mrf.mxu1 }
 0x191   : > { %v518_v61 = vadd.f32 %v2429_v55, %v517_v60  ;;  %v743_v60 = vpop.permute.xlu2 %742 }
 0x193   : > { %v538_v63 = vmax.f32 %v518_v61, 0.0 }
 0x195   : > { %v547_v0 = vpack.c.bf16 %v538_v63, %v537_v62  ;;  %v278_v62 = vld [vmem:[%s2437_s19 + $0x60] sm:$0xff] }
 0x197   : > { %655 = vmatmul.bf16.gmra.mxu2 %v547_v0  ;;  %v279_v0 = vld [vmem:[%s2437_s19 + $0x68] sm:$0xff] }
 0x198   : > { %v520_v1 = vpop.f32.mrf.mxu1 }
 0x199   : > { %v521_v2 = vadd.f32 %v2429_v55, %v520_v1  ;;  %v280_v1 = vld [vmem:[%s2437_s19 + $0x70] sm:$0xff] }
 0x19b   : > { %v539_v5 = vmax.f32 %v521_v2, 0.0 }
 0x1a0   : > { %v522_v3 = vpop.f32.mrf.mxu1 }
 0x1a1   : > { %v523_v4 = vadd.f32 %v2429_v55, %v522_v3 }
 0x1a3   : > { %v540_v6 = vmax.f32 %v523_v4, 0.0 }
 0x1a5   : > { %v548_v7 = vpack.c.bf16 %v540_v6, %v539_v5  ;;  %v1894_v5 = vld [vmem:[%s3227_s2 + $0xc] sm:$0xf]  ;;  %v1991_v6 = vld [vmem:[%s3227_s2 + $0x20] sm:$0xf0] }
 0x1a7   : > { %660 = vmatmul.bf16.gmra.mxu2 %v548_v7  ;;  %v1895_v7 = vor.u32 %v1991_v6, %v1894_v5 }
 0x1a9   : > { %1198 = vmatpush.bf16.msrb.mxu2 %v1895_v7  ;;  %2011 = vmatpush.bf16.msra.mxu3 %v1895_v7 }
 0x1ba   : > { %v626_v9 = vpop.f32.mrf.mxu2 }
 0x1bb   : > { %v2474_v10 = vadd.f32 %v2471_v8, %v626_v9 }
 0x1bd   : > { %v666_v11 = vmul.f32 0.5, %v2474_v10 }
 0x1bf   : > { %v682_v12 = vmul.f32 1.442695, %v666_v11 }
 0x1c1   : > { %2063 = vpow2.f32 %v682_v12 }
 0x1c2   : > { %v628_v13 = vpop.f32.mrf.mxu2 }
 0x1c3   : > { %v2478_v55 = vadd.f32 %v2471_v8, %v628_v13 }
 0x1c5   : > { %v667_v15 = vmul.f32 0.5, %v2478_v55 }
 0x1c7   : > { %v2481_v16 = vpop.eup %2063  ;;  %v684_v17 = vmul.f32 1.442695, %v667_v15 }
 0x1c8   : > { %v778_v18 = vmul.f32 %v2481_v16, %v731_v14 }
 0x1c9   : > { %2065 = vpow2.f32 %v684_v17 }
 0x1ca   : > { %v631_v19 = vpop.f32.mrf.mxu2  ;;  %810 = vrot.lane.b32.xlu0 %v778_v18, %s2178_s26 }
 0x1cb   : > { %v2486_v20 = vadd.f32 %v2471_v8, %v631_v19 }
 0x1cd   : > { %v668_v22 = vmul.f32 0.5, %v2486_v20 }
 0x1cf   : > { %v2489_v23 = vpop.eup %2065  ;;  %v686_v25 = vmul.f32 1.442695, %v668_v22 }
 0x1d0   : > { %v779_v26 = vmul.f32 %v2489_v23, %v733_v21 }
 0x1d1   : > { %2067 = vpow2.f32 %v686_v25 }
 0x1d2   : > { %v633_v27 = vpop.f32.mrf.mxu2  ;;  %812 = vrot.lane.b32.xlu1 %v779_v26, %s2178_s26  ;;  %744 = vrot.lane.b32.xlu0 %v273_v24, %s2177_s24 }
 0x1d3   : > { %v2496_v28 = vadd.f32 %v2471_v8, %v633_v27 }
 0x1d5   : > { %v669_v30 = vmul.f32 0.5, %v2496_v28 }
 0x1d7   : > { %v2499_v31 = vpop.eup %2067  ;;  %v688_v33 = vmul.f32 1.442695, %v669_v30 }
 0x1d8   : > { %v780_v34 = vmul.f32 %v2499_v31, %v735_v29 }
 0x1d9   : > { %2069 = vpow2.f32 %v688_v33 }
 0x1da   : > { %v636_v35 = vpop.f32.mrf.mxu2  ;;  %814 = vrot.lane.b32.xlu1 %v780_v34, %s2178_s26  ;;  %746 = vrot.lane.b32.xlu0 %v274_v32, %s2177_s24 }
 0x1db   : > { %v2506_v36 = vadd.f32 %v2471_v8, %v636_v35 }
 0x1dd   : > { %v670_v38 = vmul.f32 0.5, %v2506_v36 }
 0x1df   : > { %v2509_v39 = vpop.eup %2069  ;;  %v690_v41 = vmul.f32 1.442695, %v670_v38 }
 0x1e0   : > { %v781_v42 = vmul.f32 %v2509_v39, %v737_v37 }
 0x1e1   : > { %2071 = vpow2.f32 %v690_v41 }
 0x1e2   : > { %v638_v44 = vpop.f32.mrf.mxu2  ;;  %816 = vrot.lane.b32.xlu2 %v781_v42, %s2178_s26  ;;  %748 = vrot.lane.b32.xlu1 %v275_v40, %s2177_s24 }
 0x1e3   : > { %v2516_v45 = vadd.f32 %v2471_v8, %v638_v44 }
 0x1e5   : > { %v671_v46 = vmul.f32 0.5, %v2516_v45 }
 0x1e7   : > { %v2519_v47 = vpop.eup %2071  ;;  %v692_v49 = vmul.f32 1.442695, %v671_v46 }
 0x1e8   : > { %v782_v50 = vmul.f32 %v2519_v47, %v739_v43 }
 0x1e9   : > { %2073 = vpow2.f32 %v692_v49 }
 0x1ea   : > { %v641_v51 = vpop.f32.mrf.mxu2  ;;  %818 = vrot.lane.b32.xlu2 %v782_v50, %s2178_s26  ;;  %750 = vrot.lane.b32.xlu1 %v276_v48, %s2177_s24 }
 0x1eb   : > { %v2526_v52 = vadd.f32 %v2471_v8, %v641_v51 }
 0x1ed   : > { %v672_v54 = vmul.f32 0.5, %v2526_v52 }
 0x1ef   : > { %v2529_v56 = vpop.eup %2073  ;;  %v694_v58 = vmul.f32 1.442695, %v672_v54 }
 0x1f0   : > { %v783_v59 = vmul.f32 %v2529_v56, %v741_v53 }
 0x1f1   : > { %2075 = vpow2.f32 %v694_v58 }
 0x1f2   : > { %752 = vrot.lane.b32.xlu2 %v277_v57, %s2177_s24  ;;  %820 = vrot.lane.b32.xlu0 %v783_v59, %s2178_s26  ;;  %v643_v2 = vpop.f32.mrf.mxu2 }
 0x1f3   : > { %v2552_v11 = vadd.f32 %v2471_v8, %v643_v2  ;;  %v281_v2 = vld [vmem:[%s2437_s19 + $0x78] sm:$0xff]  ;;  %s2920_s19 = sld [smem:[#allocation2]] }
 0x1f5   : > { %v673_v13 = vmul.f32 0.5, %v2552_v11 }
 0x1f7   : > { %v2535_v61 = vpop.eup %2075  ;;  %v696_v17 = vmul.f32 1.442695, %v673_v13 }
 0x1f8   : > { %v784_v63 = vmul.f32 %v2535_v61, %v743_v60 }
 0x1f9   : > { %2077 = vpow2.f32 %v696_v17  ;;  %s1608_s15 = ssub.f32 -0.9189385, %s2920_s19 }
 0x1fa   : > { %754 = vrot.lane.b32.xlu2 %v278_v62, %s2177_s24  ;;  %822 = vrot.lane.b32.xlu0 %v784_v63, %s2178_s26  ;;  %v646_v3 = vpop.f32.mrf.mxu2 }
 0x1fb   : > { %v2559_v15 = vadd.f32 %v2471_v8, %v646_v3  ;;  %s1609_s6 = smul.f32 32.0, %s1608_s15 }
 0x1fd   : > { %v674_v22 = vmul.f32 0.5, %v2559_v15 }
 0x1ff   : > { %v698_v26 = vmul.f32 1.442695, %v674_v22  ;;  %v2566_v30 = vpop.eup %2077 }
 0x202   : > { %756 = vrot.lane.b32.xlu0 %v279_v0, %s2177_s24  ;;  %v648_v4 = vpop.f32.mrf.mxu2 }
 0x203   : > { %v2564_v24 = vadd.f32 %v2471_v8, %v648_v4 }
 0x205   : > { %v675_v37 = vmul.f32 0.5, %v2564_v24 }
 0x207   : > { %v700_v42 = vmul.f32 1.442695, %v675_v37 }
 0x20a   : > { %758 = vrot.lane.b32.xlu0 %v280_v1, %s2177_s24  ;;  %v651_v9 = vpop.f32.mrf.mxu2 }
 0x20b   : > { %v2575_v41 = vadd.f32 %v2471_v8, %v651_v9 }
 0x20d   : > { %v676_v54 = vmul.f32 0.5, %v2575_v41 }
 0x20f   : > { %v702_v58 = vmul.f32 1.442695, %v676_v54  ;;  %v894_v54 = vmul.f32 %v2506_v36, %v2506_v36 }
 0x212   : > { %v653_v12 = vpop.f32.mrf.mxu2 }
 0x213   : > { %v2556_v14 = vadd.f32 %v2471_v8, %v653_v12 }
 0x215   : > { %v677_v21 = vmul.f32 0.5, %v2556_v14 }
 0x217   : > { %v704_v25 = vmul.f32 1.442695, %v677_v21 }
 0x219   : > { %2079 = vpow2.f32 %v704_v25 }
 0x21a   : > { %2081 = vpow2.f32 %v698_v26  ;;  %v656_v40 = vpop.f32.mrf.mxu2 }
 0x21b   : > { %v2578_v43 = vadd.f32 %v2471_v8, %v656_v40  ;;  %2083 = vpow2.f32 %v700_v42 }
 0x21c   : > { %2085 = vpow2.f32 %v702_v58  ;;  %v897_v58 = vmul.f32 %v2552_v11, %v2552_v11 }
 0x21d   : > { %v678_v57 = vmul.f32 0.5, %v2578_v43 }
 0x21f   : > { %v2580_v44 = vpop.eup %2079  ;;  %v706_v60 = vmul.f32 1.442695, %v678_v57  ;;  %v899_v57 = vmul.f32 %v2564_v24, %v2564_v24 }
 0x220   : > { %v2582_v49 = vpop.eup %2081 }
 0x221   : > { %v2591_v62 = vpop.eup %2083  ;;  %2087 = vpow2.f32 %v706_v60  ;;  %v900_v60 = vmul.f32 %v2575_v41, %v2575_v41 }
 0x222   : > { %v2599_v5 = vpop.eup %2085  ;;  %v658_v9 = vpop.f32.mrf.mxu2 }
 0x223   : > { %v2608_v17 = vadd.f32 %v2471_v8, %v658_v9 }
 0x225   : > { %v679_v22 = vmul.f32 0.5, %v2608_v17 }
 0x227   : > { %v2601_v7 = vpop.eup %2087 }
 0x22a   : > { %v661_v25 = vpop.f32.mrf.mxu2 }
 0x23c   : > { %v817_v18 = vpop.permute.xlu2 %816  ;;  %v811_v19 = vpop.permute.xlu0 %810 }
 0x23d   : > { %v858_v32 = vadd.f32 %v811_v19, %v2474_v10  ;;  %v861_v0 = vadd.f32 %v817_v18, %v2496_v28 }
 0x244   : > { %v819_v27 = vpop.permute.xlu2 %818  ;;  %v813_v29 = vpop.permute.xlu1 %812 }
 0x245   : > { %v859_v33 = vadd.f32 %v813_v29, %v2478_v55  ;;  %v745_v34 = vpop.permute.xlu0 %744  ;;  %v862_v19 = vadd.f32 %v819_v27, %v2506_v36  ;;  %v2615_v29 = vadd.f32 %v2471_v8, %v661_v25 }
 0x246   : > { %v785_v35 = vmul.f32 %v2566_v30, %v745_v34 }
 0x247   : > { %v1147_v38 = vpack.c.bf16 %v859_v33, %v858_v32  ;;  %v708_v32 = vmul.f32 1.442695, %v679_v22  ;;  %v680_v34 = vmul.f32 0.5, %v2615_v29 }
 0x248   : > { %824 = vrot.lane.b32.xlu1 %v785_v35, %s2178_s26 }
 0x249   : > { %1896 = vmatmul.msk.bf16.vlgmr.msrb.gmra.mxu2 %vm1082_vm1, %v1147_v38  ;;  %2089 = vpow2.f32 %v708_v32  ;;  %v710_v35 = vmul.f32 1.442695, %v680_v34 }
 0x24b   : > { %2091 = vpow2.f32 %v710_v35  ;;  %v892_v35 = vmul.f32 %v2486_v20, %v2486_v20 }
 0x24c   : > { %v753_v46 = vpop.permute.xlu2 %752  ;;  %v815_v48 = vpop.permute.xlu1 %814 }
 0x24d   : > { %v789_v50 = vmul.f32 %v2580_v44, %v753_v46  ;;  %v747_v51 = vpop.permute.xlu0 %746  ;;  %v860_v59 = vadd.f32 %v815_v48, %v2486_v20  ;;  %v890_v48 = vmul.f32 %v2474_v10, %v2474_v10 }
 0x24e   : > { %v786_v53 = vmul.f32 %v2582_v49, %v747_v51  ;;  %v891_v51 = vmul.f32 %v2478_v55, %v2478_v55 }
 0x24f   : > { %832 = vrot.lane.b32.xlu0 %v789_v50, %s2178_s26  ;;  %v1148_v3 = vpack.c.bf16 %v861_v0, %v860_v59  ;;  %v2618_v37 = vpop.eup %2089  ;;  %v893_v50 = vmul.f32 %v2496_v28, %v2496_v28  ;;  %v902_v59 = vmul.f32 %v2578_v43, %v2578_v43 }
 0x250   : > { %826 = vrot.lane.b32.xlu1 %v786_v53, %s2178_s26  ;;  %v896_v53 = vmul.f32 %v2526_v52, %v2526_v52 }
 0x251   : > { %v2622_v40 = vpop.eup %2091 }
 0x254   : > { %v749_v63 = vpop.permute.xlu1 %748  ;;  %v755_v4 = vpop.permute.xlu2 %754 }
 0x255   : > { %v787_v1 = vmul.f32 %v2591_v62, %v749_v63  ;;  %v790_v13 = vmul.f32 %v2601_v7, %v755_v4  ;;  %v663_v63 = vpop.f32.mrf.mxu2 }
 0x256   : > { %v2654_v0 = vadd.f32 %v2471_v8, %v663_v63 }
 0x257   : > { %828 = vrot.lane.b32.xlu2 %v787_v1, %s2178_s26 }
 0x258   : > { %760 = vrot.lane.b32.xlu1 %v281_v2, %s2177_s24  ;;  %v905_v1 = vmul.f32 %v2654_v0, %v2654_v0  ;;  %v903_v2 = vmul.f32 %v2608_v17, %v2608_v17  ;;  %v681_v9 = vmul.f32 0.5, %v2654_v0 }
 0x259   : > { %1897 = vmatmul.msk.bf16.gmra.mxu2 %vm1082_vm1, %v1148_v3 }
 0x25c   : > { %v751_v6 = vpop.permute.xlu1 %750 }
 0x25d   : > { %v788_v12 = vmul.f32 %v2599_v5, %v751_v6 }
 0x25f   : > { %830 = vrot.lane.b32.xlu2 %v788_v12, %s2178_s26 }
 0x260   : > { %834 = vrot.lane.b32.xlu1 %v790_v13, %s2178_s26  ;;  %v712_v13 = vmul.f32 1.442695, %v681_v9  ;;  %v901_v9 = vmul.f32 %v2556_v14, %v2556_v14 }
 0x262   : > { %2093 = vpow2.f32 %v712_v13 }
 0x264   : > { %v821_v18 = vpop.permute.xlu0 %820 }
 0x265   : > { %v863_v21 = vadd.f32 %v821_v18, %v2516_v45 }
 0x267   : > { %v1149_v26 = vpack.c.bf16 %v863_v21, %v862_v19 }
 0x268   : > { %v2667_v22 = vpop.eup %2093 }
 0x269   : > { %1898 = vmatmul.msk.bf16.gmra.mxu2 %vm1082_vm1, %v1149_v26 }
 0x26c   : > { %v823_v33 = vpop.permute.xlu0 %822 }
 0x26d   : > { %v864_v4 = vadd.f32 %v823_v33, %v2526_v52 }
 0x274   : > { %v757_v27 = vpop.permute.xlu0 %756 }
 0x275   : > { %v791_v38 = vmul.f32 %v2618_v37, %v757_v27 }
 0x277   : > { %836 = vrot.lane.b32.xlu2 %v791_v38, %s2178_s26  ;;  %v874_v38 = vmul.f32 %v2481_v16, %v2481_v16  ;;  %v877_v16 = vmul.f32 %v2509_v39, %v2509_v39 }
 0x27c   : > { %v759_v42 = vpop.permute.xlu0 %758 }
 0x27d   : > { %v792_v46 = vmul.f32 %v2622_v40, %v759_v42 }
 0x27f   : > { %922 = vrot.lane.b32.xlu2 %v890_v48, %s2177_s24  ;;  %838 = vrot.lane.b32.xlu0 %v792_v46, %s2178_s26 }
 0x287   : > { %928 = vrot.lane.b32.xlu2 %v893_v50, %s2177_s24  ;;  %924 = vrot.lane.b32.xlu0 %v891_v51, %s2177_s24  ;;  %v895_v51 = vmul.f32 %v2516_v45, %v2516_v45 }
 0x28f   : > { %934 = vrot.lane.b32.xlu2 %v896_v53, %s2177_s24  ;;  %930 = vrot.lane.b32.xlu0 %v894_v54, %s2177_s24 }
 0x297   : > { %940 = vrot.lane.b32.xlu2 %v899_v57, %s2177_s24  ;;  %936 = vrot.lane.b32.xlu0 %v897_v58, %s2177_s24 }
 0x29f   : > { %946 = vrot.lane.b32.xlu2 %v902_v59, %s2177_s24  ;;  %942 = vrot.lane.b32.xlu0 %v900_v60, %s2177_s24  ;;  %v898_v60 = vmul.f32 %v2559_v15, %v2559_v15 }
 0x2a7   : > { %952 = vrot.lane.b32.xlu2 %v905_v1, %s2177_s24  ;;  %948 = vrot.lane.b32.xlu0 %v903_v2, %s2177_s24 }
 0x2b1   : > { %v829_v8 = vpop.permute.xlu2 %828 }
 0x2b2   : > { %v867_v26 = vadd.f32 %v829_v8, %v2564_v24 }
 0x2b9   : > { %v831_v19 = vpop.permute.xlu2 %830 }
 0x2ba   : > { %v825_v3 = vpop.permute.xlu1 %824  ;;  %v868_v50 = vadd.f32 %v831_v19, %v2575_v41 }
 0x2bb   : > { %v865_v6 = vadd.f32 %v825_v3, %v2552_v11 }
 0x2bd   : > { %v1150_v12 = vpack.c.bf16 %v865_v6, %v864_v4 }
 0x2bf   : > { %1899 = vmatmul.msk.bf16.vlgmr.msra.gmra.mxu3 %vm1082_vm1, %v1150_v12 }
 0x2c1   : > { %v833_v27 = vpop.permute.xlu0 %832 }
 0x2c2   : > { %v827_v18 = vpop.permute.xlu1 %826  ;;  %v869_v42 = vadd.f32 %v833_v27, %v2556_v14 }
 0x2c3   : > { %v866_v21 = vadd.f32 %v827_v18, %v2559_v15 }
 0x2c4   : > { %v1152_v54 = vpack.c.bf16 %v869_v42, %v868_v50 }
 0x2c5   : > { %v1151_v33 = vpack.c.bf16 %v867_v26, %v866_v21  ;;  %v904_v21 = vmul.f32 %v2615_v29, %v2615_v29 }
 0x2ca   : > { %v761_v25 = vpop.permute.xlu1 %760 }
 0x2cb   : > { %v793_v32 = vmul.f32 %v2667_v22, %v761_v25 }
 0x2cd   : > { %840 = vrot.lane.b32.xlu1 %v793_v32, %s2178_s26 }
 0x2cf   : > { %1900 = vmatmul.msk.bf16.gmra.mxu3 %vm1082_vm1, %v1151_v33  ;;  %v886_v33 = vmul.f32 %v2601_v7, %v2601_v7  ;;  %v1998_v7 = vld [vmem:[%s3227_s2 + $0x144] sm:$0xf0] }
 0x2d1   : > { %v837_v34 = vpop.permute.xlu2 %836 }
 0x2d2   : > { %v835_v1 = vpop.permute.xlu1 %834  ;;  %v871_v39 = vadd.f32 %v837_v34, %v2608_v17  ;;  %v875_v34 = vmul.f32 %v2489_v23, %v2489_v23 }
 0x2d3   : > { %v870_v3 = vadd.f32 %v835_v1, %v2578_v43 }
 0x2d5   : > { %926 = vrot.lane.b32.xlu1 %v892_v35, %s2177_s24  ;;  %v1153_v8 = vpack.c.bf16 %v871_v39, %v870_v3  ;;  %v1918_v39 = vld [vmem:[%s3227_s2 + $0xa0] sm:$0xf] }
 0x2d9   : > { %v923_v46 = vpop.permute.xlu2 %922 }
 0x2da   : > { %v970_v48 = vadd.f32 %v923_v46, %v874_v38 }
 0x2dc   : > { %v1876_v53 = vadd.f32 -1.0, %v970_v48 }
 0x2dd   : > { %932 = vrot.lane.b32.xlu1 %v895_v51, %s2177_s24  ;;  %v1930_v51 = vld [vmem:[%s3227_s2 + $0x130] sm:$0xf] }
 0x2de   : > { %v1002_v57 = vsub.f32 %v1876_v53, %v2474_v10  ;;  %v880_v10 = vmul.f32 %v2535_v61, %v2535_v61  ;;  %v883_v61 = vmul.f32 %v2591_v62, %v2591_v62  ;;  %v1999_v62 = vld [vmem:[%s3227_s2 + $0x174] sm:$0xf0]  ;;  %v1931_v23 = vor.u32 %v1998_v7, %v1930_v51 }
 0x2df   : > { %1901 = vmatmul.msk.bf16.gmra.mxu3 %vm1082_vm1, %v1152_v54  ;;  %v889_v53 = vmul.f32 %v2667_v22, %v2667_v22  ;;  %v1997_v54 = vld [vmem:[%s3227_s2 + $0x114] sm:$0xf0]  ;;  %v1922_v22 = vld [vmem:[%s3227_s2 + $0xd0] sm:$0xf]  ;;  %v876_v51 = vmul.f32 %v2499_v31, %v2499_v31  ;;  %v879_v31 = vmul.f32 %v2529_v56, %v2529_v56 }
 0x2e0   : > { %1034 = vrot.lane.b32.xlu0 %v1002_v57, %s2178_s26 }
 0x2e1   : > { %v929_v58 = vpop.permute.xlu2 %928 }
 0x2e2   : > { %v973_v59 = vadd.f32 %v929_v58, %v877_v16 }
 0x2e4   : > { %v1879_v63 = vadd.f32 -1.0, %v973_v59 }
 0x2e5   : > { %938 = vrot.lane.b32.xlu1 %v898_v60, %s2177_s24 }
 0x2e6   : > { %v1005_v2 = vsub.f32 %v1879_v63, %v2496_v28 }
 0x2e8   : > { %1040 = vrot.lane.b32.xlu0 %v1005_v2, %s2178_s26 }
 0x2e9   : > { %v935_v4 = vpop.permute.xlu2 %934 }
 0x2ea   : > { %v976_v6 = vadd.f32 %v935_v4, %v880_v10  ;;  %v1995_v4 = vld [vmem:[%s3227_s2 + $0xb4] sm:$0xf0] }
 0x2ec   : > { %v1882_v12 = vadd.f32 -1.0, %v976_v6  ;;  %v881_v6 = vmul.f32 %v2566_v30, %v2566_v30  ;;  %v887_v30 = vmul.f32 %v2618_v37, %v2618_v37  ;;  %v1910_v37 = vld [vmem:[%s3227_s2 + $0x40] sm:$0xf] }
 0x2ed   : > { %944 = vrot.lane.b32.xlu1 %v901_v9, %s2177_s24 }
 0x2ee   : > { %v1008_v28 = vsub.f32 %v1882_v12, %v2526_v52  ;;  %v1934_v52 = vld [vmem:[%s3227_s2 + $0x160] sm:$0xf]  ;;  %v1919_v12 = vor.u32 %v1995_v4, %v1918_v39 }
 0x2ef   : > { %1902 = vmatmul.msk.bf16.gmra.mxu3 %vm1082_vm1, %v1153_v8  ;;  %v1935_v32 = vor.u32 %v1999_v62, %v1934_v52 }
 0x2f0   : > { %1046 = vrot.lane.b32.xlu0 %v1008_v28, %s2178_s26 }
 0x2f1   : > { %v941_v13 = vpop.permute.xlu2 %940  ;;  %v2705_v18 = vpop.permute.xlu0 %838  ;;  %1332 = vmatpush.bf16.msrb.mxu3 %v1935_v32 }
 0x2f2   : > { %v979_v19 = vadd.f32 %v941_v13, %v883_v61  ;;  %v884_v61 = vmul.f32 %v2599_v5, %v2599_v5  ;;  %v1914_v5 = vld [vmem:[%s3227_s2 + $0x70] sm:$0xf] }
 0x2f4   : > { %v1885_v25 = vadd.f32 -1.0, %v979_v19 }
 0x2f5   : > { %950 = vrot.lane.b32.xlu1 %v904_v21, %s2177_s24  ;;  %1333 = vmatpush.bf16.msrb.mxu3 %v1931_v23  ;;  %v2797_v23 = vld [vmem:[%s3228_s3 + $0x3] ss:$0 sm:$0xff]  ;;  %s1523_s24 = smul.f32 -2.0, %s2920_s19 }
 0x2f6   : > { %v1011_v26 = vsub.f32 %v1885_v25, %v2564_v24 }
 0x2f8   : > { %1052 = vrot.lane.b32.xlu0 %v1011_v26, %s2178_s26 }
 0x2f9   : > { %v947_v35 = vpop.permute.xlu2 %946  ;;  %v925_v27 = vpop.permute.xlu0 %924 }
 0x2fa   : > { %v982_v24 = vadd.f32 %v947_v35, %v886_v33  ;;  %v971_v38 = vadd.f32 %v925_v27, %v875_v34  ;;  %v1906_v34 = vld [vmem:[%s3227_s2 + $0x10] sm:$0xf]  ;;  %v1992_v35 = vld [vmem:[%s3227_s2 + $0x24] sm:$0xf0] }
 0x2fb   : > { %v1907_v27 = vor.u32 %v1992_v35, %v1906_v34 }
 0x2fc   : > { %v1888_v42 = vadd.f32 -1.0, %v982_v24  ;;  %v1877_v46 = vadd.f32 -1.0, %v971_v38  ;;  %v1200_v24 = vpop.f32.mrf.mxu2 }
 0x2fe   : > { %v1014_v48 = vsub.f32 %v1888_v42, %v2578_v43  ;;  %v1003_v50 = vsub.f32 %v1877_v46, %v2478_v55  ;;  %v878_v43 = vmul.f32 %v2519_v47, %v2519_v47  ;;  %v1926_v55 = vld [vmem:[%s3227_s2 + $0x100] sm:$0xf]  ;;  %v1996_v47 = vld [vmem:[%s3227_s2 + $0xe4] sm:$0xf0]  ;;  %v872_v46 = vadd.f32 %v2705_v18, %v2615_v29 }
 0x2ff   : > { %v1927_v58 = vor.u32 %v1997_v54, %v1926_v55  ;;  %v1923_v2 = vor.u32 %v1996_v47, %v1922_v22  ;;  %v1201_v18 = vadd.f32 %v2797_v23, %v1200_v24 }
 0x300   : > { %1058 = vrot.lane.b32.xlu0 %v1014_v48, %s2178_s26  ;;  %1036 = vrot.lane.b32.xlu1 %v1003_v50, %s2178_s26 }
 0x301   : > { %v953_v57 = vpop.permute.xlu2 %952  ;;  %v931_v16 = vpop.permute.xlu0 %930  ;;  %1334 = vmatpush.bf16.msrb.mxu3 %v1927_v58  ;;  %v1240_v58 = vmax.f32 %v1201_v18, 0.0 }
 0x302   : > { %v985_v59 = vadd.f32 %v953_v57, %v889_v53  ;;  %v974_v60 = vadd.f32 %v931_v16, %v878_v43 }
 0x304   : > { %v1891_v63 = vadd.f32 -1.0, %v985_v59  ;;  %v1880_v1 = vadd.f32 -1.0, %v974_v60  ;;  %v1202_v38 = vpop.f32.mrf.mxu2 }
 0x305   : > { %1335 = vmatpush.bf16.msrb.mxu3 %v1923_v2  ;;  %v1203_v55 = vadd.f32 %v2797_v23, %v1202_v38 }
 0x306   : > { %v1017_v10 = vsub.f32 %v1891_v63, %v2654_v0  ;;  %v1006_v3 = vsub.f32 %v1880_v1, %v2506_v36 }
 0x307   : > { %v1241_v57 = vmax.f32 %v1203_v55, 0.0 }
 0x308   : > { %1064 = vrot.lane.b32.xlu0 %v1017_v10, %s2178_s26  ;;  %1042 = vrot.lane.b32.xlu1 %v1006_v3, %s2178_s26 }
 0x309   : > { %v937_v9 = vpop.permute.xlu0 %936  ;;  %1336 = vmatpush.bf16.msrb.mxu3 %v1919_v12  ;;  %v1256_v60 = vpack.c.bf16 %v1241_v57, %v1240_v58  ;;  %v2006_v57 = vld [vmem:[%s3227_s2 + $0x148] sm:$0xf0] }
 0x30a   : > { %v977_v8 = vadd.f32 %v937_v9, %v881_v6 }
 0x30c   : > { %v1883_v36 = vadd.f32 -1.0, %v977_v8  ;;  %v1205_v43 = vpop.f32.mrf.mxu2 }
 0x30d   : > { %v1206_v4 = vadd.f32 %v2797_v23, %v1205_v43 }
 0x30e   : > { %v1009_v28 = vsub.f32 %v1883_v36, %v2552_v11 }
 0x30f   : > { %v1242_v36 = vmax.f32 %v1206_v4, 0.0 }
 0x310   : > { %1048 = vrot.lane.b32.xlu1 %v1009_v28, %s2178_s26 }
 0x311   : > { %v943_v13 = vpop.permute.xlu0 %942 }
 0x312   : > { %v980_v19 = vadd.f32 %v943_v13, %v884_v61 }
 0x314   : > { %v1886_v21 = vadd.f32 -1.0, %v980_v19  ;;  %v1207_v63 = vpop.f32.mrf.mxu2 }
 0x315   : > { %v1208_v3 = vadd.f32 %v2797_v23, %v1207_v63  ;;  %v1958_v63 = vld [vmem:[%s3227_s2 + $0x104] sm:$0xf] }
 0x316   : > { %v1012_v25 = vsub.f32 %v1886_v21, %v2575_v41  ;;  %v1994_v41 = vld [vmem:[%s3227_s2 + $0x84] sm:$0xf0] }
 0x317   : > { %v1915_v32 = vor.u32 %v1994_v41, %v1914_v5  ;;  %v1243_v12 = vmax.f32 %v1208_v3, 0.0 }
 0x318   : > { %1054 = vrot.lane.b32.xlu1 %v1012_v25, %s2178_s26 }
 0x319   : > { %v949_v26 = vpop.permute.xlu0 %948  ;;  %1337 = vmatpush.bf16.msrb.mxu3 %v1915_v32  ;;  %v1257_v13 = vpack.c.bf16 %v1243_v12, %v1242_v36  ;;  %v2004_v12 = vld [vmem:[%s3227_s2 + $0xe8] sm:$0xf0] }
 0x31a   : > { %v983_v52 = vadd.f32 %v949_v26, %v887_v30 }
 0x31c   : > { %v1889_v62 = vadd.f32 -1.0, %v983_v52  ;;  %v1210_v9 = vpop.f32.mrf.mxu2 }
 0x31e   : > { %v1015_v11 = vsub.f32 %v1889_v62, %v2608_v17  ;;  %v1993_v17 = vld [vmem:[%s3227_s2 + $0x54] sm:$0xf0]  ;;  %v1211_v62 = vadd.f32 %v2797_v23, %v1210_v9  ;;  %v1954_v9 = vld [vmem:[%s3227_s2 + $0xd4] sm:$0xf] }
 0x31f   : > { %v1911_v33 = vor.u32 %v1993_v17, %v1910_v37 }
 0x320   : > { %1060 = vrot.lane.b32.xlu1 %v1015_v11, %s2178_s26 }
 0x321   : > { %1338 = vmatpush.bf16.msrb.mxu3 %v1911_v33 }
 0x324   : > { %v1212_v21 = vpop.f32.mrf.mxu2 }
 0x325   : > { %1339 = vmatpush.bf16.msrb.mxu3 %v1907_v27  ;;  %v1213_v26 = vadd.f32 %v2797_v23, %v1212_v21 }
 0x327   : > { %v1245_v5 = vmax.f32 %v1213_v26, 0.0 }
 0x33f   : > { %v841_v42 = vpop.permute.xlu1 %840 }
 0x340   : > { %v873_v48 = vadd.f32 %v841_v42, %v2654_v0 }
 0x342   : > { %v1154_v50 = vpack.c.bf16 %v873_v48, %v872_v46  ;;  %v1966_v46 = vld [vmem:[%s3227_s2 + $0x164] sm:$0xf]  ;;  %v2007_v48 = vld [vmem:[%s3227_s2 + $0x178] sm:$0xf0] }
 0x344   : > { %1903 = vmatmul.msk.bf16.gmra.mxu3 %vm1082_vm1, %v1154_v50  ;;  %v1967_v50 = vor.u32 %v2007_v48, %v1966_v46 }
 0x346   : > { %1473 = vmatpush.bf16.msrb.mxu0 %v1967_v50 }
 0x347   : > { %v927_v7 = vpop.permute.xlu1 %926 }
 0x348   : > { %v972_v53 = vadd.f32 %v927_v7, %v876_v51 }
 0x34a   : > { %v1878_v54 = vadd.f32 -1.0, %v972_v53 }
 0x34c   : > { %v1004_v0 = vsub.f32 %v1878_v54, %v2486_v20  ;;  %v882_v20 = vmul.f32 %v2582_v49, %v2582_v49  ;;  %v1215_v49 = vpop.f32.mrf.mxu3 }
 0x34d   : > { %v1216_v34 = vadd.f32 %v2797_v23, %v1215_v49 }
 0x34e   : > { %1038 = vrot.lane.b32.xlu2 %v1004_v0, %s2178_s26  ;;  %v1962_v0 = vld [vmem:[%s3227_s2 + $0x134] sm:$0xf] }
 0x34f   : > { %v933_v16 = vpop.permute.xlu1 %932  ;;  %v1246_v24 = vmax.f32 %v1216_v34, 0.0  ;;  %v2001_v34 = vld [vmem:[%s3227_s2 + $0x58] sm:$0xf0] }
 0x350   : > { %v975_v59 = vadd.f32 %v933_v16, %v879_v31  ;;  %v1963_v31 = vor.u32 %v2006_v57, %v1962_v0 }
 0x352   : > { %v1881_v22 = vadd.f32 -1.0, %v975_v59  ;;  %v1035_v47 = vpop.permute.xlu0 %1034  ;;  %1474 = vmatpush.bf16.msrb.mxu0 %v1963_v31 }
 0x353   : > { %v1083_v1 = vsel %vm1082_vm1, %v1035_v47, 0.0 }
 0x354   : > { %v1007_v2 = vsub.f32 %v1881_v22, %v2516_v45  ;;  %1340 = vmatmul.bf16.vlgmr.msrb.gmra.mxu3 %v1256_v60  ;;  %1084 = vadd.xlane.f32.xlu1 %v1083_v1  ;;  %v885_v45 = vmul.f32 %v2580_v44, %v2580_v44  ;;  %v1217_v52 = vpop.f32.mrf.mxu3  ;;  %v2005_v1 = vld [vmem:[%s3227_s2 + $0x118] sm:$0xf0] }
 0x356   : > { %1044 = vrot.lane.b32.xlu2 %v1007_v2, %s2178_s26 }
 0x357   : > { %v939_v10 = vpop.permute.xlu1 %938 }
 0x358   : > { %v978_v56 = vadd.f32 %v939_v10, %v882_v20  ;;  %v1959_v20 = vor.u32 %v2005_v1, %v1958_v63 }
 0x35a   : > { %v1884_v39 = vadd.f32 -1.0, %v978_v56  ;;  %v1041_v2 = vpop.permute.xlu0 %1040  ;;  %1475 = vmatpush.bf16.msrb.mxu0 %v1959_v20 }
 0x35c   : > { %v1010_v6 = vsub.f32 %v1884_v39, %v2559_v15  ;;  %v888_v15 = vmul.f32 %v2622_v40, %v2622_v40  ;;  %v1220_v37 = vpop.f32.mrf.mxu3  ;;  %v1218_v40 = vadd.f32 %v2797_v23, %v1217_v52  ;;  %v1092_v39 = vsel %vm1082_vm1, %v1041_v2, 0.0  ;;  %v1950_v52 = vld [vmem:[%s3227_s2 + $0xa4] sm:$0xf] }
 0x35d   : > { %v1221_v55 = vadd.f32 %v2797_v23, %v1220_v37 }
 0x35e   : > { %1050 = vrot.lane.b32.xlu2 %v1010_v6, %s2178_s26  ;;  %v1247_v35 = vmax.f32 %v1218_v40, 0.0 }
 0x35f   : > { %v945_v8 = vpop.permute.xlu1 %944  ;;  %v1248_v18 = vmax.f32 %v1221_v55, 0.0 }
 0x360   : > { %v981_v28 = vadd.f32 %v945_v8, %v885_v45  ;;  %v1259_v38 = vpack.c.bf16 %v1247_v35, %v1246_v24  ;;  %v1955_v45 = vor.u32 %v2004_v12, %v1954_v9  ;;  %v1938_v24 = vld [vmem:[%s3227_s2 + $0x14] sm:$0xf] }
 0x362   : > { %v1887_v61 = vadd.f32 -1.0, %v981_v28  ;;  %1476 = vmatpush.bf16.msrb.mxu0 %v1955_v45  ;;  %v1047_v36 = vpop.permute.xlu0 %1046 }
 0x364   : > { %v1013_v19 = vsub.f32 %v1887_v61, %v2556_v14  ;;  %1345 = vmatmul.bf16.gmra.mxu3 %v1257_v13  ;;  %v1244_v14 = vmax.f32 %v1211_v62, 0.0  ;;  %v1222_v27 = vpop.f32.mrf.mxu3  ;;  %v2003_v62 = vld [vmem:[%s3227_s2 + $0xb8] sm:$0xf0] }
 0x365   : > { %v1223_v7 = vadd.f32 %v2797_v23, %v1222_v27 }
 0x366   : > { %1056 = vrot.lane.b32.xlu2 %v1013_v19, %s2178_s26  ;;  %v1258_v32 = vpack.c.bf16 %v1245_v5, %v1244_v14  ;;  %v1946_v14 = vld [vmem:[%s3227_s2 + $0x74] sm:$0xf] }
 0x367   : > { %v951_v25 = vpop.permute.xlu1 %950  ;;  %v1249_v54 = vmax.f32 %v1223_v7, 0.0 }
 0x368   : > { %v984_v30 = vadd.f32 %v951_v25, %v888_v15 }
 0x369   : > { %v1260_v58 = vpack.c.bf16 %v1249_v54, %v1248_v18 }
 0x36a   : > { %v1890_v44 = vadd.f32 -1.0, %v984_v30  ;;  %v1101_v30 = vsel %vm1082_vm1, %v1047_v36, 0.0  ;;  %v1053_v26 = vpop.permute.xlu0 %1052 }
 0x36b   : > { %v1110_v37 = vsel %vm1082_vm1, %v1053_v26, 0.0 }
 0x36c   : > { %v1016_v11 = vsub.f32 %v1890_v44, %v2615_v29  ;;  %v1225_v51 = vpop.f32.mrf.mxu3 }
 0x36d   : > { %v1226_v10 = vadd.f32 %v2797_v23, %v1225_v51 }
 0x36e   : > { %1062 = vrot.lane.b32.xlu2 %v1016_v11, %s2178_s26  ;;  %v1951_v11 = vor.u32 %v2003_v62, %v1950_v52 }
 0x36f   : > { %v1250_v4 = vmax.f32 %v1226_v10, 0.0 }
 0x370   : > { %1477 = vmatpush.bf16.msrb.mxu0 %v1951_v11 }
 0x372   : > { %v1037_v41 = vpop.permute.xlu1 %1036 }
 0x373   : > { %v1086_v22 = vsel %vm1082_vm1, %v1037_v41, 0.0  ;;  %v2002_v41 = vld [vmem:[%s3227_s2 + $0x88] sm:$0xf0] }
 0x374   : > { %1350 = vmatmul.bf16.gmra.mxu3 %v1258_v32  ;;  %v1227_v59 = vpop.f32.mrf.mxu3  ;;  %v1947_v40 = vor.u32 %v2002_v41, %v1946_v14 }
 0x375   : > { %v1228_v47 = vadd.f32 %v2797_v23, %v1227_v59 }
 0x376   : > { %1478 = vmatpush.bf16.msrb.mxu0 %v1947_v40 }
 0x377   : > { %v1251_v3 = vmax.f32 %v1228_v47, 0.0 }
 0x379   : > { %v1261_v6 = vpack.c.bf16 %v1251_v3, %v1250_v4 }
 0x37a   : > { %v1043_v17 = vpop.permute.xlu1 %1042 }
 0x37b   : > { %v1095_v33 = vsel %vm1082_vm1, %v1043_v17, 0.0  ;;  %v1059_v17 = vpop.permute.xlu0 %1058 }
 0x37c   : > { %1096 = vadd.xlane.f32.xlu1 %v1095_v33  ;;  %v1230_v56 = vpop.f32.mrf.mxu3  ;;  %v1942_v33 = vld [vmem:[%s3227_s2 + $0x44] sm:$0xf] }
 0x37d   : > { %v1231_v13 = vadd.f32 %v2797_v23, %v1230_v56  ;;  %v1943_v35 = vor.u32 %v2001_v34, %v1942_v33 }
 0x37f   : > { %v1252_v15 = vmax.f32 %v1231_v13, 0.0  ;;  %1479 = vmatpush.bf16.msrb.mxu0 %v1943_v35 }
 0x382   : > { %v1049_v29 = vpop.permute.xlu1 %1048 }
 0x383   : > { %v1104_v42 = vsel %vm1082_vm1, %v1049_v29, 0.0  ;;  %v2000_v29 = vld [vmem:[%s3227_s2 + $0x28] sm:$0xf0]  ;;  %v1065_v48 = vpop.permute.xlu0 %1064 }
 0x384   : > { %1355 = vmatmul.bf16.gmra.mxu3 %v1259_v38  ;;  %1105 = vadd.xlane.f32.xlu1 %v1104_v42  ;;  %v1232_v8 = vpop.f32.mrf.mxu3  ;;  %v1119_v42 = vsel %vm1082_vm1, %v1059_v17, 0.0  ;;  %v1939_v46 = vor.u32 %v2000_v29, %v1938_v24 }
 0x385   : > { %v1233_v61 = vadd.f32 %v2797_v23, %v1232_v8 }
 0x386   : > { %1480 = vmatpush.bf16.msrb.mxu0 %v1939_v46  ;;  %v2903_v46 = vld [vmem:[%s3228_s3 + $0x5] ss:$0 sm:$0xff] }
 0x387   : > { %v1253_v19 = vmax.f32 %v1233_v61, 0.0 }
 0x389   : > { %v1262_v44 = vpack.c.bf16 %v1253_v19, %v1252_v15 }
 0x38a   : > { %v1055_v53 = vpop.permute.xlu1 %1054 }
 0x38b   : > { %v1113_v43 = vsel %vm1082_vm1, %v1055_v53, 0.0  ;;  %v1128_v53 = vsel %vm1082_vm1, %v1065_v48, 0.0 }
 0x38c   : > { %1114 = vadd.xlane.f32.xlu1 %v1113_v43 }
 0x392   : > { %v1061_v16 = vpop.permute.xlu1 %1060 }
 0x393   : > { %v1122_v60 = vsel %vm1082_vm1, %v1061_v16, 0.0  ;;  %v2061_v16 = vld [vmem:[%s3228_s3 + $0x4] ss:$0 sm:$0xff] }
 0x394   : > { %1360 = vmatmul.bf16.gmra.mxu3 %v1260_v58  ;;  %1123 = vadd.xlane.f32.xlu1 %v1122_v60 }
 0x397   : > { %1087 = vadd.xlane.f32.xlu2 %v1086_v22 }
 0x39f   : > { %1093 = vadd.xlane.f32.xlu2 %v1092_v39 }
 0x3a4   : > { %1365 = vmatmul.bf16.gmra.mxu3 %v1261_v6 }
 0x3a8   : > { %v1039_v28 = vpop.permute.xlu2 %1038 }
 0x3a9   : > { %v1089_v49 = vsel %vm1082_vm1, %v1039_v28, 0.0 }
 0x3aa   : > { %1090 = vadd.xlane.f32.xlu0 %v1089_v49 }
 0x3b0   : > { %v1045_v21 = vpop.permute.xlu2 %1044 }
 0x3b1   : > { %v1098_v25 = vsel %vm1082_vm1, %v1045_v21, 0.0 }
 0x3b2   : > { %1099 = vadd.xlane.f32.xlu2 %v1098_v25  ;;  %1102 = vadd.xlane.f32.xlu0 %v1101_v30 }
 0x3b4   : > { %1370 = vmatmul.bf16.gmra.mxu3 %v1262_v44 }
 0x3b8   : > { %v1051_v5 = vpop.permute.xlu2 %1050 }
 0x3b9   : > { %v1107_v32 = vsel %vm1082_vm1, %v1051_v5, 0.0 }
 0x3ba   : > { %1108 = vadd.xlane.f32.xlu2 %v1107_v32  ;;  %1111 = vadd.xlane.f32.xlu0 %v1110_v37 }
 0x3c0   : > { %v1057_v27 = vpop.permute.xlu2 %1056 }
 0x3c1   : > { %v1116_v38 = vsel %vm1082_vm1, %v1057_v27, 0.0 }
 0x3c2   : > { %1117 = vadd.xlane.f32.xlu2 %v1116_v38  ;;  %1120 = vadd.xlane.f32.xlu0 %v1119_v42 }
 0x3c7   : > { %v1235_v50 = vpop.f32.mrf.mxu3 }
 0x3c8   : > { %v1063_v51 = vpop.permute.xlu2 %1062  ;;  %v1236_v43 = vadd.f32 %v2797_v23, %v1235_v50 }
 0x3c9   : > { %v1125_v7 = vsel %vm1082_vm1, %v1063_v51, 0.0 }
 0x3ca   : > { %1126 = vadd.xlane.f32.xlu2 %v1125_v7  ;;  %1129 = vadd.xlane.f32.xlu0 %v1128_v53  ;;  %v1254_v18 = vmax.f32 %v1236_v43, 0.0 }
 0x3cf   : > { %v1237_v55 = vpop.f32.mrf.mxu3 }
 0x3d0   : > { %v1238_v54 = vadd.f32 %v2797_v23, %v1237_v55 }
 0x3d2   : > { %v1255_v0 = vmax.f32 %v1238_v54, 0.0  ;;  %v2097_v54 = vld [vmem:[%s2283_s18] sm:$0xff] }
 0x3d4   : > { %v1263_v57 = vpack.c.bf16 %v1255_v0, %v1254_v18 }
 0x3d6   : > { %1375 = vmatmul.bf16.gmra.mxu3 %v1263_v57 }
 0x3d7   : > { %v1341_v31 = vpop.f32.mrf.mxu3 }
 0x3d8   : > { %v1342_v58 = vadd.f32 %v2061_v16, %v1341_v31 }
 0x3da   : > { %v1381_v22 = vmax.f32 %v1342_v58, 0.0 }
 0x3df   : > { %v1343_v59 = vpop.f32.mrf.mxu3 }
 0x3e0   : > { %v1344_v60 = vadd.f32 %v2061_v16, %v1343_v59 }
 0x3e2   : > { %v1382_v47 = vmax.f32 %v1344_v60, 0.0 }
 0x3e4   : > { %v1397_v63 = vpack.c.bf16 %v1382_v47, %v1381_v22 }
 0x3e6   : > { %1481 = vmatmul.bf16.vlgmr.msrb.gmra.mxu0 %v1397_v63 }
 0x3e7   : > { %v1346_v1 = vpop.f32.mrf.mxu3 }
 0x3e8   : > { %v1347_v2 = vadd.f32 %v2061_v16, %v1346_v1  ;;  %v2099_v1 = vld [vmem:[%s2283_s18 + $0x10] sm:$0xff] }
 0x3ea   : > { %v1383_v10 = vmax.f32 %v1347_v2, 0.0 }
 0x3ef   : > { %v1348_v20 = vpop.f32.mrf.mxu3 }
 0x3f0   : > { %v1349_v23 = vadd.f32 %v2061_v16, %v1348_v20 }
 0x3f2   : > { %v1384_v56 = vmax.f32 %v1349_v23, 0.0 }
 0x3f4   : > { %v1398_v3 = vpack.c.bf16 %v1384_v56, %v1383_v10 }
 0x3f6   : > { %1486 = vmatmul.bf16.gmra.mxu0 %v1398_v3  ;;  %v2100_v3 = vld [vmem:[%s2283_s18 + $0x18] sm:$0xff] }
 0x3f7   : > { %v1351_v39 = vpop.f32.mrf.mxu3 }
 0x3f8   : > { %v1352_v4 = vadd.f32 %v2061_v16, %v1351_v39 }
 0x3fa   : > { %v1385_v12 = vmax.f32 %v1352_v4, 0.0 }
 0x3ff   : > { %v1353_v6 = vpop.f32.mrf.mxu3 }
 0x400   : > { %v1354_v9 = vadd.f32 %v2061_v16, %v1353_v6  ;;  %v1524_v6 = vstv %s1523_s24 }
 0x402   : > { %v1386_v45 = vmax.f32 %v1354_v9, 0.0  ;;  %v1525_v9 = vmul.f32 1.442695, %v1524_v6 }
 0x404   : > { %v1399_v8 = vpack.c.bf16 %v1386_v45, %v1385_v12  ;;  %2095 = vpow2.f32 %v1525_v9 }
 0x406   : > { %1491 = vmatmul.bf16.gmra.mxu0 %v1399_v8 }
 0x407   : > { %v1356_v36 = vpop.f32.mrf.mxu3 }
 0x408   : > { %v1357_v28 = vadd.f32 %v2061_v16, %v1356_v36  ;;  %v2101_v36 = vld [vmem:[%s2283_s18 + $0x20] sm:$0xff] }
 0x40a   : > { %v1387_v13 = vmax.f32 %v1357_v28, 0.0 }
 0x40f   : > { %v1358_v49 = vpop.f32.mrf.mxu3 }
 0x410   : > { %v1359_v61 = vadd.f32 %v2061_v16, %v1358_v49 }
 0x412   : > { %v1388_v19 = vmax.f32 %v1359_v61, 0.0  ;;  %v2096_v61 = vpop.eup %2095 }
 0x413   : > { %2012 = vpush %v2096_v61 }
 0x414   : > { %v1400_v15 = vpack.c.bf16 %v1388_v19, %v1387_v13 }
 0x416   : > { %1496 = vmatmul.bf16.gmra.mxu0 %v1400_v15 }
 0x417   : > { %v1361_v21 = vpop.f32.mrf.mxu3 }
 0x418   : > { %v1362_v25 = vadd.f32 %v2061_v16, %v1361_v21  ;;  %v2102_v21 = vld [vmem:[%s2283_s18 + $0x28] sm:$0xff] }
 0x41a   : > { %v1389_v44 = vmax.f32 %v1362_v25, 0.0 }
 0x41f   : > { %v1363_v30 = vpop.f32.mrf.mxu3 }
 0x420   : > { %v1364_v26 = vadd.f32 %v2061_v16, %v1363_v30 }
 0x422   : > { %v1390_v52 = vmax.f32 %v1364_v26, 0.0 }
 0x424   : > { %v1401_v62 = vpack.c.bf16 %v1390_v52, %v1389_v44 }
 0x426   : > { %1501 = vmatmul.bf16.gmra.mxu0 %v1401_v62  ;;  %v2103_v62 = vld [vmem:[%s2283_s18 + $0x30] sm:$0xff] }
 0x427   : > { %v1366_v11 = vpop.f32.mrf.mxu3 }
 0x428   : > { %v1367_v5 = vadd.f32 %v2061_v16, %v1366_v11 }
 0x42a   : > { %v1391_v32 = vmax.f32 %v1367_v5, 0.0 }
 0x42f   : > { %v1368_v14 = vpop.f32.mrf.mxu3 }
 0x430   : > { %v1369_v41 = vadd.f32 %v2061_v16, %v1368_v14 }
 0x432   : > { %v1392_v37 = vmax.f32 %v1369_v41, 0.0 }
 0x434   : > { %v1402_v40 = vpack.c.bf16 %v1392_v37, %v1391_v32  ;;  %v2104_v37 = vld [vmem:[%s2283_s18 + $0x38] sm:$0xff] }
 0x436   : > { %1506 = vmatmul.bf16.gmra.mxu0 %v1402_v40 }
 0x437   : > { %v1371_v17 = vpop.f32.mrf.mxu3 }
 0x438   : > { %v1372_v33 = vadd.f32 %v2061_v16, %v1371_v17 }
 0x43a   : > { %v1393_v27 = vmax.f32 %v1372_v33, 0.0 }
 0x43f   : > { %v1373_v34 = vpop.f32.mrf.mxu3 }
 0x440   : > { %v1374_v35 = vadd.f32 %v2061_v16, %v1373_v34 }
 0x442   : > { %v1394_v24 = vmax.f32 %v1374_v35, 0.0 }
 0x444   : > { %v1403_v29 = vpack.c.bf16 %v1394_v24, %v1393_v27  ;;  %v2105_v27 = vld [vmem:[%s2283_s18 + $0x40] sm:$0xff]  ;;  %s2013_s14 = spop %2012 }
 0x445   : > { %s1610_s27 = smul.f32 0.5, %s2013_s14  ;;  %s2133_s14 = scalar_lea.hbm %s3230_s5, 256 }
 0x446   : > { %1511 = vmatmul.bf16.gmra.mxu0 %v1403_v29 }
 0x459   : > { %v1376_v38 = vpop.f32.mrf.mxu3 }
 0x45a   : > { %v1377_v42 = vadd.f32 %v2061_v16, %v1376_v38 }
 0x45c   : > { %v1395_v7 = vmax.f32 %v1377_v42, 0.0 }
 0x461   : > { %v1378_v48 = vpop.f32.mrf.mxu3 }
 0x462   : > { %v1379_v50 = vadd.f32 %v2061_v16, %v1378_v48  ;;  %v2098_v16 = vld [vmem:[%s2283_s18 + $0x8] sm:$0xff] }
 0x463   : > { %v1482_v51 = vpop.f32.mrf.mxu0 }
 0x464   : > { %v1396_v53 = vmax.f32 %v1379_v50, 0.0  ;;  %v2906_v43 = vadd.f32 %v2903_v46, %v1482_v51  ;;  %v2965_v50 = vpop.xlane.xlu2 %1087  ;;  %v2106_v51 = vld [vmem:[%s2283_s18 + $0x48] sm:$0xff] }
 0x466   : > { %v1404_v55 = vpack.c.bf16 %v1396_v53, %v1395_v7  ;;  %v1528_v18 = vsub.f32 %v2097_v54, %v2906_v43  ;;  %v1085_v53 = vpop.xlane.xlu1 %1084 }
 0x468   : > { %1516 = vmatmul.bf16.gmra.mxu0 %v1404_v55  ;;  %v1544_v0 = vmul.f32 %v1528_v18, %v1528_v18 }
 0x46a   : > { %v1560_v57 = vsel %vm310_vm0, %v1544_v0, 0.0 }
 0x46b   : > { %v1484_v31 = vpop.f32.mrf.mxu0  ;;  %1561 = vadd.xlane.f32.xlu1 %v1560_v57  ;;  %v2107_v57 = vld [vmem:[%s2283_s18 + $0x50] sm:$0xff] }
 0x46c   : > { %v2912_v58 = vadd.f32 %v2903_v46, %v1484_v31 }
 0x46e   : > { %v1529_v59 = vsub.f32 %v2098_v16, %v2912_v58  ;;  %v2975_v16 = vpop.xlane.xlu1 %1096 }
 0x470   : > { %v1545_v60 = vmul.f32 %v1529_v59, %v1529_v59  ;;  %v2977_v59 = vpop.xlane.xlu2 %1093 }
 0x472   : > { %v1563_v22 = vsel %vm310_vm0, %v1545_v60, 0.0 }
 0x473   : > { %v1487_v47 = vpop.f32.mrf.mxu0  ;;  %1564 = vadd.xlane.f32.xlu2 %v1563_v22 }
 0x474   : > { %v2918_v63 = vadd.f32 %v2903_v46, %v1487_v47 }
 0x476   : > { %v1530_v2 = vsub.f32 %v2099_v1, %v2918_v63 }
 0x478   : > { %v1546_v20 = vmul.f32 %v1530_v2, %v1530_v2  ;;  %v2983_v2 = vpop.xlane.xlu0 %1090 }
 0x47a   : > { %v1566_v23 = vsel %vm310_vm0, %v1546_v20, 0.0  ;;  %v2108_v20 = vld [vmem:[%s2283_s18 + $0x58] sm:$0xff] }
 0x47b   : > { %v1489_v10 = vpop.f32.mrf.mxu0  ;;  %1567 = vadd.xlane.f32.xlu0 %v1566_v23 }
 0x47c   : > { %v2926_v56 = vadd.f32 %v2903_v46, %v1489_v10  ;;  %v2987_v10 = vpop.xlane.xlu2 %1099 }
 0x47e   : > { %v1531_v39 = vsub.f32 %v2100_v3, %v2926_v56 }
 0x480   : > { %v1547_v4 = vmul.f32 %v1531_v39, %v1531_v39  ;;  %v2989_v39 = vpop.xlane.xlu1 %1105 }
 0x482   : > { %v1569_v12 = vsel %vm310_vm0, %v1547_v4, 0.0 }
 0x483   : > { %v1492_v45 = vpop.f32.mrf.mxu0  ;;  %1570 = vadd.xlane.f32.xlu1 %v1569_v12  ;;  %v2109_v12 = vld [vmem:[%s2283_s18 + $0x60] sm:$0xff] }
 0x484   : > { %v2933_v8 = vadd.f32 %v2903_v46, %v1492_v45 }
 0x486   : > { %v1532_v28 = vsub.f32 %v2101_v36, %v2933_v8  ;;  %v2997_v36 = vpop.xlane.xlu0 %1102 }
 0x488   : > { %v1548_v49 = vmul.f32 %v1532_v28, %v1532_v28 }
 0x48a   : > { %v1572_v13 = vsel %vm310_vm0, %v1548_v49, 0.0  ;;  %v2999_v49 = vpop.xlane.xlu2 %1108 }
 0x48b   : > { %v1494_v19 = vpop.f32.mrf.mxu0  ;;  %1573 = vadd.xlane.f32.xlu2 %v1572_v13 }
 0x48c   : > { %v2939_v15 = vadd.f32 %v2903_v46, %v1494_v19  ;;  %v3002_v19 = vpop.xlane.xlu1 %1114 }
 0x48e   : > { %v1533_v25 = vsub.f32 %v2102_v21, %v2939_v15 }
 0x490   : > { %v1549_v30 = vmul.f32 %v1533_v25, %v1533_v25  ;;  %v2110_v25 = vld [vmem:[%s2283_s18 + $0x68] sm:$0xff] }
 0x492   : > { %v1575_v26 = vsel %vm310_vm0, %v1549_v30, 0.0 }
 0x493   : > { %v1497_v44 = vpop.f32.mrf.mxu0  ;;  %1576 = vadd.xlane.f32.xlu0 %v1575_v26 }
 0x494   : > { %v2945_v52 = vadd.f32 %v2903_v46, %v1497_v44  ;;  %v3009_v44 = vpop.xlane.xlu0 %1111 }
 0x496   : > { %v1534_v11 = vsub.f32 %v2103_v62, %v2945_v52 }
 0x498   : > { %v1550_v5 = vmul.f32 %v1534_v11, %v1534_v11  ;;  %v3012_v11 = vpop.xlane.xlu2 %1117 }
 0x49a   : > { %v1578_v14 = vsel %vm310_vm0, %v1550_v5, 0.0  ;;  %v3014_v5 = vpop.xlane.xlu1 %1123 }
 0x49b   : > { %v1499_v41 = vpop.f32.mrf.mxu0  ;;  %1579 = vadd.xlane.f32.xlu1 %v1578_v14  ;;  %v1645_v14 = vlaneseq }
 0x49c   : > { %v2951_v32 = vadd.f32 %v2903_v46, %v1499_v41  ;;  %v3017_v41 = vpop.xlane.xlu0 %1120 }
 0x49e   : > { %v1535_v40 = vsub.f32 %v2104_v37, %v2951_v32  ;;  %v3019_v37 = vstv %s1610_s27 }
 0x4a0   : > { %v1551_v17 = vmul.f32 %v1535_v40, %v1535_v40  ;;  %v3021_v40 = vand.u32 127, %v1645_v14 }
 0x4a2   : > { %v1581_v33 = vsel %vm310_vm0, %v1551_v17, 0.0  ;;  %v3024_v17 = vpop.xlane.xlu2 %1126  ;;  %vm1648_vm2 = vcmp.eq.s32.totalorder %v3021_v40, 33  ;;  %vm1647_vm3 = vcmp.eq.s32.totalorder %v3021_v40, 32 }
 0x4a3   : > { %v1502_v34 = vpop.f32.mrf.mxu0  ;;  %1582 = vadd.xlane.f32.xlu2 %v1581_v33  ;;  %v3026_v33 = vstv %s1609_s6 }
 0x4a4   : > { %v2957_v35 = vadd.f32 %v2903_v46, %v1502_v34 }
 0x4a6   : > { %v1536_v24 = vsub.f32 %v2105_v27, %v2957_v35 }
 0x4a8   : > { %v1552_v29 = vmul.f32 %v1536_v24, %v1536_v24 }
 0x4aa   : > { %v1584_v38 = vsel %vm310_vm0, %v1552_v29, 0.0  ;;  %v1131_v29 = vmul.f32 0.5, %v1085_v53 }
 0x4ab   : > { %v1504_v42 = vpop.f32.mrf.mxu0  ;;  %1585 = vadd.xlane.f32.xlu0 %v1584_v38 }
 0x4ac   : > { %v2963_v48 = vadd.f32 %v2903_v46, %v1504_v42 }
 0x4ae   : > { %v1537_v7 = vsub.f32 %v2106_v51, %v2963_v48 }
 0x4b0   : > { %v1553_v55 = vmul.f32 %v1537_v7, %v1537_v7  ;;  %v3042_v7 = vpop.xlane.xlu0 %1129 }
 0x4b2   : > { %v1587_v54 = vsel %vm310_vm0, %v1553_v55, 0.0 }
 0x4b3   : > { %v1507_v18 = vpop.f32.mrf.mxu0  ;;  %1588 = vadd.xlane.f32.xlu1 %v1587_v54 }
 0x4b4   : > { %v2971_v0 = vadd.f32 %v2903_v46, %v1507_v18  ;;  %v2111_v18 = vld [vmem:[%s2283_s18 + $0x70] sm:$0xff] }
 0x4b6   : > { %v1538_v31 = vsub.f32 %v2107_v57, %v2971_v0 }
 0x4b8   : > { %v1554_v60 = vmul.f32 %v1538_v31, %v1538_v31  ;;  %v1132_v31 = vmul.f32 0.5, %v2965_v50 }
 0x4ba   : > { %v1590_v22 = vsel %vm310_vm0, %v1554_v60, 0.0 }
 0x4bb   : > { %v1509_v47 = vpop.f32.mrf.mxu0  ;;  %1591 = vadd.xlane.f32.xlu2 %v1590_v22 }
 0x4bc   : > { %v2981_v1 = vadd.f32 %v2903_v46, %v1509_v47 }
 0x4be   : > { %v1539_v23 = vsub.f32 %v2108_v20, %v2981_v1 }
 0x4c0   : > { %v1555_v3 = vmul.f32 %v1539_v23, %v1539_v23 }
 0x4c2   : > { %v1593_v4 = vsel %vm310_vm0, %v1555_v3, 0.0 }
 0x4c3   : > { %v1512_v6 = vpop.f32.mrf.mxu0  ;;  %1594 = vadd.xlane.f32.xlu0 %v1593_v4 }
 0x4c4   : > { %v2993_v9 = vadd.f32 %v2903_v46, %v1512_v6  ;;  %v2112_v6 = vld [vmem:[%s2283_s18 + $0x78] sm:$0xff]  ;;  %s2008_s18 = sshll.u32 %s2235_s4, 7  ;;  %s1710_s4 = sshll.u32 %s3039_s9, 4  ;;  %s1711_s4 = int_to_ptr.vmem [resolvable:$true] %s1710_s4 }
 0x4c5   : > { %s1709_s12 = scalar_lea.hbm %s3230_s5, %s2008_s18 }
 0x4c6   : > { %v1540_v45 = vsub.f32 %v2109_v12, %v2993_v9  ;;  %s1712_s26 = sshll.u32 %s1709_s12, 4  ;;  %s1713_s26 = int_to_ptr.hbm [resolvable:$true] %s1712_s26 }
 0x4c7   : > { %s2127_s16 = sshra.s32 %s1713_s26, 4  ;;  %s2128_s16 = int_to_ptr.hbm [resolvable:$true] %s2127_s16 }
 0x4c8   : > { %v1556_v28 = vmul.f32 %v1540_v45, %v1540_v45  ;;  %v1133_v45 = vmul.f32 0.5, %v2983_v2  ;;  %v1134_v2 = vmul.f32 0.5, %v2977_v59  ;;  %s2129_s17 = scalar_lea.hbm %s2128_s16, 128  ;;  %p2134_p0 = scmp.lt.s32.totalorder %s2128_s16, %s3230_s5 }
 0x4c9   : > { %p2130_p11 = scmp.ne.s32.totalorder %s2128_s16, %s2129_s17  ;;  %p2135_p1 = scmp.lt.s32.totalorder %s2133_s14, %s2129_s17 }
 0x4ca   : > { %v1596_v61 = vsel %vm310_vm0, %v1556_v28, 0.0 }
 0x4cb   : > { %v1514_v13 = vpop.f32.mrf.mxu0  ;;  %1597 = vadd.xlane.f32.xlu1 %v1596_v61  ;;  %p2131_p12 = pnand %p2130_p11, %p2252_p5  ;;  %p2136_p2 = por %p2135_p1, %p2134_p0 }
 0x4cc   : > { %v3005_v21 = vadd.f32 %v2903_v46, %v1514_v13 }
 0x4cd   : > { %p2132_p13 = pneg %p2131_p12 }
 0x4ce   : > { %v1541_v30 = vsub.f32 %v2110_v25, %v3005_v21 }
 0x4cf   : > { %p2137_p3 = pnand %p2136_p2, %p2132_p13 }
 0x4d0   : > { %v1557_v26 = vmul.f32 %v1541_v30, %v1541_v30 }
 0x4d2   : > { %v1599_v62 = vsel %vm310_vm0, %v1557_v26, 0.0 }
 0x4d3   : > { %1600 = vadd.xlane.f32.xlu2 %v1599_v62 }
 0x4de   : > { %v1562_v34 = vpop.xlane.xlu1 %1561 }
 0x4df   : > { %v1612_v27 = vmul.f32 %v3019_v37, %v1562_v34 }
 0x4e1   : > { %v1629_v24 = vsub.f32 %v3026_v33, %v1612_v27 }
 0x4e3   : > { %v1649_v38 = vsel %vm1648_vm2, %v1629_v24, %v2906_v43  ;;  %v1135_v24 = vmul.f32 0.5, %v2975_v16 }
 0x4e4   : > { %v1665_v42 = vsel %vm1647_vm3, %v1131_v29, %v1649_v38 }
 0x4e5   : > { %1681 = vst [vmem:[%s3039_s9] sm:$0xff] %v1665_v42  ;;  %v1517_v51 = vpop.f32.mrf.mxu0 }
 0x4e6   : > { %v3045_v55 = vadd.f32 %v2903_v46, %v1517_v51  ;;  %v1565_v54 = vpop.xlane.xlu2 %1564  ;;  %v1136_v51 = vmul.f32 0.5, %v2987_v10 }
 0x4e7   : > { %v1613_v53 = vmul.f32 %v3019_v37, %v1565_v54 }
 0x4e8   : > { %v1542_v43 = vsub.f32 %v2111_v18, %v3045_v55 }
 0x4e9   : > { %v1630_v57 = vsub.f32 %v3026_v33, %v1613_v53 }
 0x4ea   : > { %v1558_v60 = vmul.f32 %v1542_v43, %v1542_v43  ;;  %v1137_v43 = vmul.f32 0.5, %v2997_v36 }
 0x4eb   : > { %v1650_v22 = vsel %vm1648_vm2, %v1630_v57, %v2912_v58 }
 0x4ec   : > { %v1666_v47 = vsel %vm1647_vm3, %v1132_v31, %v1650_v22  ;;  %v1602_v20 = vsel %vm310_vm0, %v1558_v60, 0.0  ;;  %v1138_v22 = vmul.f32 0.5, %v2989_v39 }
 0x4ed   : > { %1682 = vst [vmem:[%s3039_s9 + $0x8] sm:$0xff] %v1666_v47  ;;  %v1519_v23 = vpop.f32.mrf.mxu0  ;;  %1603 = vadd.xlane.f32.xlu0 %v1602_v20 }
 0x4ee   : > { %v3060_v3 = vadd.f32 %v2903_v46, %v1519_v23  ;;  %v1568_v4 = vpop.xlane.xlu0 %1567 }
 0x4ef   : > { %v1614_v50 = vmul.f32 %v3019_v37, %v1568_v4  ;;  %v1139_v4 = vmul.f32 0.5, %v2999_v49 }
 0x4f0   : > { %v1543_v12 = vsub.f32 %v2112_v6, %v3060_v3 }
 0x4f1   : > { %v1631_v58 = vsub.f32 %v3026_v33, %v1614_v50 }
 0x4f2   : > { %v1559_v28 = vmul.f32 %v1543_v12, %v1543_v12 }
 0x4f3   : > { %v1651_v61 = vsel %vm1648_vm2, %v1631_v58, %v2918_v63  ;;  %v1140_v58 = vmul.f32 0.5, %v3009_v44 }
 0x4f4   : > { %v1667_v46 = vsel %vm1647_vm3, %v1133_v45, %v1651_v61  ;;  %v1605_v13 = vsel %vm310_vm0, %v1559_v28, 0.0 }
 0x4f5   : > { %1683 = vst [vmem:[%s3039_s9 + $0x10] sm:$0xff] %v1667_v46  ;;  %1606 = vadd.xlane.f32.xlu1 %v1605_v13  ;;  %v1141_v46 = vmul.f32 0.5, %v3002_v19 }
 0x4f6   : > { %v1571_v25 = vpop.xlane.xlu1 %1570 }
 0x4f7   : > { %v1615_v30 = vmul.f32 %v3019_v37, %v1571_v25 }
 0x4f9   : > { %v1632_v26 = vsub.f32 %v3026_v33, %v1615_v30 }
 0x4fb   : > { %v1652_v62 = vsel %vm1648_vm2, %v1632_v26, %v2926_v56  ;;  %v1142_v26 = vmul.f32 0.5, %v3012_v11 }
 0x4fc   : > { %v1668_v63 = vsel %vm1647_vm3, %v1134_v2, %v1652_v62 }
 0x4fd   : > { %1684 = vst [vmem:[%s3039_s9 + $0x18] sm:$0xff] %v1668_v63 }
 0x4fe   : > { %v1574_v14 = vpop.xlane.xlu2 %1573 }
 0x4ff   : > { %v1616_v34 = vmul.f32 %v3019_v37, %v1574_v14  ;;  %v1143_v14 = vmul.f32 0.5, %v3017_v41 }
 0x501   : > { %v1633_v27 = vsub.f32 %v3026_v33, %v1616_v34 }
 0x503   : > { %v1653_v59 = vsel %vm1648_vm2, %v1633_v27, %v2933_v8 }
 0x504   : > { %v1669_v56 = vsel %vm1647_vm3, %v1135_v24, %v1653_v59  ;;  %v1144_v59 = vmul.f32 0.5, %v3014_v5 }
 0x505   : > { %1685 = vst [vmem:[%s3039_s9 + $0x20] sm:$0xff] %v1669_v56 }
 0x506   : > { %v1577_v29 = vpop.xlane.xlu0 %1576 }
 0x507   : > { %v1617_v38 = vmul.f32 %v3019_v37, %v1577_v29 }
 0x509   : > { %v1634_v42 = vsub.f32 %v3026_v33, %v1617_v38 }
 0x50b   : > { %v1654_v16 = vsel %vm1648_vm2, %v1634_v42, %v2939_v15  ;;  %v1145_v42 = vmul.f32 0.5, %v3024_v17 }
 0x50c   : > { %v1670_v8 = vsel %vm1647_vm3, %v1136_v51, %v1654_v16 }
 0x50d   : > { %1686 = vst [vmem:[%s3039_s9 + $0x28] sm:$0xff] %v1670_v8  ;;  %v1146_v8 = vmul.f32 0.5, %v3042_v7 }
 0x50e   : > { %v1580_v54 = vpop.xlane.xlu1 %1579 }
 0x50f   : > { %v1618_v53 = vmul.f32 %v3019_v37, %v1580_v54 }
 0x511   : > { %v1635_v18 = vsub.f32 %v3026_v33, %v1618_v53 }
 0x513   : > { %v1655_v10 = vsel %vm1648_vm2, %v1635_v18, %v2945_v52 }
 0x514   : > { %v1671_v15 = vsel %vm1647_vm3, %v1137_v43, %v1655_v10 }
 0x515   : > { %1687 = vst [vmem:[%s3039_s9 + $0x30] sm:$0xff] %v1671_v15 }
 0x516   : > { %v1583_v57 = vpop.xlane.xlu2 %1582 }
 0x517   : > { %v1619_v31 = vmul.f32 %v3019_v37, %v1583_v57 }
 0x519   : > { %v1636_v60 = vsub.f32 %v3026_v33, %v1619_v31 }
 0x51b   : > { %v1656_v36 = vsel %vm1648_vm2, %v1636_v60, %v2951_v32 }
 0x51c   : > { %v1672_v52 = vsel %vm1647_vm3, %v1138_v22, %v1656_v36 }
 0x51d   : > { %1688 = vst [vmem:[%s3039_s9 + $0x38] sm:$0xff] %v1672_v52 }
 0x51e   : > { %v1586_v47 = vpop.xlane.xlu0 %1585 }
 0x51f   : > { %v1620_v20 = vmul.f32 %v3019_v37, %v1586_v47 }
 0x521   : > { %v1637_v23 = vsub.f32 %v3026_v33, %v1620_v20 }
 0x523   : > { %v1657_v39 = vsel %vm1648_vm2, %v1637_v23, %v2957_v35 }
 0x524   : > { %v1673_v32 = vsel %vm1647_vm3, %v1139_v4, %v1657_v39 }
 0x525   : > { %1689 = vst [vmem:[%s3039_s9 + $0x40] sm:$0xff] %v1673_v32 }
 0x526   : > { %v1589_v50 = vpop.xlane.xlu1 %1588 }
 0x527   : > { %v1621_v6 = vmul.f32 %v3019_v37, %v1589_v50 }
 0x529   : > { %v1638_v12 = vsub.f32 %v3026_v33, %v1621_v6 }
 0x52b   : > { %v1658_v49 = vsel %vm1648_vm2, %v1638_v12, %v2963_v48 }
 0x52c   : > { %v1674_v35 = vsel %vm1647_vm3, %v1140_v58, %v1658_v49 }
 0x52d   : > { %1690 = vst [vmem:[%s3039_s9 + $0x48] sm:$0xff] %v1674_v35 }
 0x52e   : > { %v1592_v45 = vpop.xlane.xlu2 %1591 }
 0x52f   : > { %v1622_v28 = vmul.f32 %v3019_v37, %v1592_v45 }
 0x531   : > { %v1639_v61 = vsub.f32 %v3026_v33, %v1622_v28 }
 0x533   : > { %v1659_v44 = vsel %vm1648_vm2, %v1639_v61, %v2971_v0 }
 0x534   : > { %v1675_v48 = vsel %vm1647_vm3, %v1141_v46, %v1659_v44 }
 0x535   : > { %1691 = vst [vmem:[%s3039_s9 + $0x50] sm:$0xff] %v1675_v48 }
 0x536   : > { %v1595_v13 = vpop.xlane.xlu0 %1594 }
 0x537   : > { %v1623_v25 = vmul.f32 %v3019_v37, %v1595_v13 }
 0x539   : > { %v1640_v30 = vsub.f32 %v3026_v33, %v1623_v25 }
 0x53b   : > { %v1660_v19 = vsel %vm1648_vm2, %v1640_v30, %v2981_v1 }
 0x53c   : > { %v1676_v0 = vsel %vm1647_vm3, %v1142_v26, %v1660_v19 }
 0x53d   : > { %1692 = vst [vmem:[%s3039_s9 + $0x58] sm:$0xff] %v1676_v0 }
 0x53e   : > { %v1598_v2 = vpop.xlane.xlu1 %1597 }
 0x53f   : > { %v1624_v62 = vmul.f32 %v3019_v37, %v1598_v2 }
 0x541   : > { %v1641_v63 = vsub.f32 %v3026_v33, %v1624_v62 }
 0x543   : > { %v1661_v11 = vsel %vm1648_vm2, %v1641_v63, %v2993_v9 }
 0x544   : > { %v1677_v1 = vsel %vm1647_vm3, %v1143_v14, %v1661_v11 }
 0x545   : > { %1693 = vst [vmem:[%s3039_s9 + $0x60] sm:$0xff] %v1677_v1 }
 0x546   : > { %v1601_v34 = vpop.xlane.xlu2 %1600 }
 0x547   : > { %v1625_v27 = vmul.f32 %v3019_v37, %v1601_v34 }
 0x549   : > { %v1642_v24 = vsub.f32 %v3026_v33, %v1625_v27 }
 0x54b   : > { %v1662_v41 = vsel %vm1648_vm2, %v1642_v24, %v3005_v21 }
 0x54c   : > { %v1678_v9 = vsel %vm1647_vm3, %v1144_v59, %v1662_v41 }
 0x54d   : > { %1694 = vst [vmem:[%s3039_s9 + $0x68] sm:$0xff] %v1678_v9 }
 0x560   : > { %v1604_v56 = vpop.xlane.xlu0 %1603 }
 0x561   : > { %v1626_v29 = vmul.f32 %v3019_v37, %v1604_v56 }
 0x563   : > { %v1643_v38 = vsub.f32 %v3026_v33, %v1626_v29 }
 0x565   : > { %v1663_v5 = vsel %vm1648_vm2, %v1643_v38, %v3045_v55 }
 0x566   : > { %v1679_v21 = vsel %vm1647_vm3, %v1145_v42, %v1663_v5 }
 0x567   : > { %1695 = vst [vmem:[%s3039_s9 + $0x70] sm:$0xff] %v1679_v21 }
 0x568   : > { %v1607_v51 = vpop.xlane.xlu1 %1606 }
 0x569   : > { %v1627_v16 = vmul.f32 %v3019_v37, %v1607_v51 }
 0x56b   : > { %v1644_v17 = vsub.f32 %v3026_v33, %v1627_v16 }
 0x56d   : > { %v1664_v55 = vsel %vm1648_vm2, %v1644_v17, %v3060_v3 }
 0x56e   : > { %v1680_v54 = vsel %vm1647_vm3, %v1146_v8, %v1664_v55 }
 0x56f   : > { %1696 = vst [vmem:[%s3039_s9 + $0x78] sm:$0xff] %v1680_v54 }
 0x570   : > { %2140 = shalt.err (!%p2137_p3)
}
 0x571   : > { %s2179_s6 = smov 128   ;;  %s2180_s7 = smov 8  }
 0x572   : > { %2014 = dma.vmem_to_hbm [thread:$0]  (%p2252_p5), %s1711_s4, 2048, %s1713_s26, %s1698_s13, %s2179_s6, %s2179_s6, %s2180_s7  }
 0x573 PF: > { %p2020_p4 = scmp.ge.s32.totalorder %s2175_s23, 2  ;;  %s1727_s8 = sand.u32 1, %s2163_s20  }
 0x574   : > { %s1728_s9 = scalar_lea.sflag [#allocation4], %s1727_s8 }
 0x575   : > { %p2017_p7 = pnand %p2020_p4, %p2256_p6 }
 0x577   : > { %p2018_p8 = pneg %p2017_p7 }
 0x579   : > { %2158 = dma.done.wait (%p2018_p8), %s1728_s9, 2048  }
 0x57a   : > { %2160 = vsyncadd (%p2018_p8), %s1728_s9, 4294965248  ;;  %p16_p9 = scmp.ge.s32.totalorder %s2239_s25, 4   ;;  %s3233_s20 = smov %s2167_s21 }
 0x57b   : > { %s3234_s21 = smov %s2171_s22  ;;  %s3235_s22 = smov %s2250_s28 }
 0x57c   : > { %s3236_s23 = smov %s2239_s25  ;;  %18 = sbr.rel (!%p16_p9) target bundleno = 5 (0x5), region = 78 }
 0x581   :  { %1734 = vsyncpa [#allocation4], 1 }
 0x582   :  { %1736 = vsyncpa [#allocation4 + $0x1], 1 }

</bundles_post_ra>
